<compile_context>
chip_gen: v7x
topology: tpu7x:2x2x1
jax: 0.10.0
libtpu: 0.0.40
codegen_flags: <defaults>
</compile_context>

<pallas_src>
import functools
import math

import jax
import jax.numpy as jnp
from jax import lax
from jax.experimental import pallas as pl
from jax.experimental.pallas import tpu as pltpu

BN_EPS = 1e-5
LANE = 128
SUBLANE = 8


def _round_up(x, m):
    return (x + m - 1) // m * m


def _vmem_capacity_bytes():
    try:
        return int(pltpu.get_tpu_info().vmem_capacity_bytes)
    except Exception:
        return 64 * 1024 * 1024  # conservative fallback (v7x per-core VMEM)


# ---------------------------------------------------------------------------
# Phase 1: fused im2col + conv matmul + per-step BN partial sums.
# ---------------------------------------------------------------------------
def _conv_stats_kernel(x_ref, w_ref, y_ref, stats_ref, *, kh, kw, stride, tr, owp):
    # x_ref    : (Hstore, Wstore, Cin)  full zero-padded image (resident per n)
    # w_ref    : (KH*KW, Cin, CP)       per-tap conv weight, lane-dense Cout
    # y_ref    : (TM = tr*owp, CP)      conv output tile (y_dtype)
    # stats_ref: (2, CP)                per-grid-step partial [sum; sum of sq]
    rb = pl.program_id(1)
    cin = x_ref.shape[-1]
    tm = tr * owp
    row_step = tr * stride
    r0 = rb * row_step
    if row_step % SUBLANE == 0:
        r0 = pl.multiple_of(r0, SUBLANE)

    # Static unroll over the KH*KW taps: each tap is a (TM, Cin) x (Cin, CP)
    # MXU matmul accumulated in f32.  Patches are plain (strided) VMEM slices
    # of the resident image, so no X_col ever exists in HBM.
    acc = None
    for ki in range(kh):
        for kj in range(kw):
            if stride == 1:
                patch = x_ref[pl.ds(r0 + ki, tr), pl.ds(kj, owp), :]
            else:
                patch = x_ref[pl.ds(r0 + ki, tr, stride=stride),
                              pl.ds(kj, owp, stride=stride), :]
            lhs = patch.reshape(tm, cin)  # OWp % 16 == 0 -> aligned shape cast
            part = jnp.dot(lhs, w_ref[ki * kw + kj],
                           preferred_element_type=jnp.float32)
            acc = part if acc is None else acc + part

    # Downcast only the stored intermediate; BN stats use the f32 accumulator.
    y_ref[...] = acc.astype(y_ref.dtype)
    stats_ref[0:1, :] = jnp.sum(acc, axis=0, keepdims=True)
    stats_ref[1:2, :] = jnp.sum(acc * acc, axis=0, keepdims=True)


# ---------------------------------------------------------------------------
# Phase 2: fused (y * scale + shift) + activation, channel-major store.
# ---------------------------------------------------------------------------
def _bn_act_kernel(y_ref, scale_ref, shift_ref, o_ref, *, act):
    y = y_ref[...].astype(jnp.float32) * scale_ref[...] + shift_ref[...]
    if act == "relu":
        y = jnp.maximum(y, 0.0)
    elif act == "relu6":
        y = jnp.clip(y, 0.0, 6.0)
    elif act == "leaky":
        y = jnp.where(y >= 0.0, y, 0.01 * y)  # PyTorch LeakyReLU default slope
    elif act == "hard_swish":
        y = y * jnp.clip(y + 3.0, 0.0, 6.0) * (1.0 / 6.0)
    elif act is None:
        pass
    else:
        raise NotImplementedError(act)
    # (CP, TM) store: the final NCHW extraction becomes a cheap block permute.
    o_ref[...] = y.T.astype(o_ref.dtype)


# ---------------------------------------------------------------------------
# Tiling plan (dtype-aware, per-generation VMEM budget).
# ---------------------------------------------------------------------------
def _plan_tiles(oh, ow, h, w, padding, kh, kw, stride, cin, cp,
                compute_dtype, y_dtype, out_dtype, budget):
    cd = jnp.dtype(compute_dtype).itemsize
    yd = jnp.dtype(y_dtype).itemsize
    od = jnp.dtype(out_dtype).itemsize
    owp = _round_up(ow, 16)              # sublane-aligned padded output width
    t0 = LANE // math.gcd(owp, LANE)     # TR granule so TM = TR*OWp % 128 == 0
    tr_cap = _round_up(oh, t0)
    tr = min(tr_cap, max(t0, _round_up(-(-2048 // owp), t0)))  # target ~2K rows

    def vmem_bytes(tr_):
        tm = tr_ * owp
        ohp = _round_up(oh, tr_)
        hstore = max((ohp - 1) * stride + kh, h + 2 * padding)
        wstore = max((owp - 1) * stride + kw, w + 2 * padding)
        img = 2 * hstore * _round_up(wstore, SUBLANE) * _round_up(cin, LANE) * cd
        wgt = 2 * kh * kw * _round_up(cin, SUBLANE) * cp * cd
        ytile = 2 * tm * cp * yd
        acc = tm * cp * 4                          # f32 accumulator / temps
        phase1 = img + wgt + ytile + acc
        phase2 = 2 * tm * cp * yd + 2 * cp * tm * od + acc
        return max(phase1, phase2)

    while tr > t0 and vmem_bytes(tr) > budget:
        tr -= t0
    return tr, owp


# ---------------------------------------------------------------------------
# Public wrapper.
# ---------------------------------------------------------------------------
def conv_bn_layer(x_nchw, weight_oihw, gamma, beta, *, stride, padding, act="relu",
                  compute_dtype=jnp.bfloat16, y_dtype=None):
    """Forward pass of ConvBNLayer (train-mode batch statistics).

    compute_dtype: MXU input dtype (bf16 default = fast path; f32 for tight
    numerics).  y_dtype: storage dtype of the conv intermediate (defaults to
    compute_dtype); BN statistics always come from the f32 MXU accumulator.
    """
    # TODO(synk): num_groups > 1 (grouped / depthwise conv) not implemented.
    # TODO(synk): large images should stream row slabs (manual halo DMA) instead
    #             of keeping the whole padded image resident in VMEM.
    # TODO(synk): 1x1-conv recompute variant (skip the y round trip) not added.
    # TODO(synk): single-buffer the constant-index weight block (pl.Buffered(1)).
    if y_dtype is None:
        y_dtype = compute_dtype
    cout, cin, kh, kw = weight_oihw.shape
    n, _, h, w = x_nchw.shape
    out_dtype = x_nchw.dtype

    oh = (h + 2 * padding - kh) // stride + 1
    ow = (w + 2 * padding - kw) // stride + 1
    m_true = n * oh * ow
    cp = _round_up(cout, LANE)           # lane-dense output channels

    vmem_cap = _vmem_capacity_bytes()
    tile_budget = vmem_cap // 2
    vmem_limit = min(int(vmem_cap * 3 // 4), 100 * 1024 * 1024)

    tr, owp = _plan_tiles(oh, ow, h, w, padding, kh, kw, stride, cin, cp,
                          compute_dtype, y_dtype, out_dtype, tile_budget)
    tm = tr * owp
    ohp = _round_up(oh, tr)
    n_rb = ohp // tr
    hstore = max((ohp - 1) * stride + kh, h + 2 * padding)
    wstore = max((owp - 1) * stride + kw, w + 2 * padding)
    mp = n * ohp * owp                   # == n * n_rb * tm

    # ---- Glue: NCHW -> NHWC, zero-pad to the stored window, cast to MXU dtype.
    # Zero padding keeps every out-of-range output pixel exactly 0, so padded
    # rows/cols/channels contribute nothing to the BN sums (true m_true divisor).
    x_nhwc = jnp.transpose(x_nchw, (0, 2, 3, 1))
    x_store = jnp.pad(
        x_nhwc,
        ((0, 0),
         (padding, hstore - h - padding),
         (padding, wstore - w - padding),
         (0, 0))).astype(compute_dtype)
    # Conv weight as per-tap MXU RHS: (KH*KW, Cin, CP).
    w_taps = jnp.transpose(weight_oihw, (2, 3, 1, 0)).reshape(kh * kw, cin, cout)
    w_taps = jnp.pad(w_taps, ((0, 0), (0, 0), (0, cp - cout))).astype(compute_dtype)

    # ---- Phase 1: fused im2col + matmul + per-step BN partial sums ----------
    kernel1 = functools.partial(_conv_stats_kernel, kh=kh, kw=kw, stride=stride,
                                tr=tr, owp=owp)
    y_flat, stats = pl.pallas_call(
        kernel1,
        out_shape=(jax.ShapeDtypeStruct((mp, cp), y_dtype),
                   jax.ShapeDtypeStruct((n * n_rb, 2, cp), jnp.float32)),
        grid=(n, n_rb),
        in_specs=[
            # One full padded image, resident in VMEM while n is fixed.
            pl.BlockSpec((None, hstore, wstore, cin), lambda i, j: (i, 0, 0, 0)),
            # Conv weight, resident across all grid steps.
            pl.BlockSpec((kh * kw, cin, cp), lambda i, j: (0, 0, 0)),
        ],
        out_specs=(
            pl.BlockSpec((tm, cp), lambda i, j: (i * n_rb + j, 0)),
            pl.BlockSpec((None, 2, cp), lambda i, j: (i * n_rb + j, 0, 0)),
        ),
        compiler_params=pltpu.CompilerParams(
            dimension_semantics=("parallel", "parallel"),
            vmem_limit_bytes=vmem_limit),
    )(x_store, w_taps)

    # ---- Tiny epilogue: reduce partials, fold BN into scale & shift ---------
    gamma_p = jnp.pad(gamma.astype(jnp.float32), (0, cp - cout))
    beta_p = jnp.pad(beta.astype(jnp.float32), (0, cp - cout))
    totals = jnp.sum(stats, axis=0)                       # (2, CP)
    mean = totals[0] / m_true
    var = jnp.maximum(totals[1] / m_true - mean * mean, 0.0)  # clamp cancellation
    scale = gamma_p * lax.rsqrt(var + BN_EPS)
    shift = beta_p - mean * scale
    # NOTE: BatchNorm running_mean / running_var EMA is training state and does
    # not affect the forward output; not tracked here.

    # ---- Phase 2: fused normalize + activation, channel-major store ---------
    out_t = pl.pallas_call(
        functools.partial(_bn_act_kernel, act=act),
        out_shape=jax.ShapeDtypeStruct((cp, mp), out_dtype),
        grid=(mp // tm,),
        in_specs=[
            pl.BlockSpec((tm, cp), lambda i: (i, 0)),
            pl.BlockSpec((1, cp), lambda i: (0, 0)),
            pl.BlockSpec((1, cp), lambda i: (0, 0)),
        ],
        out_specs=pl.BlockSpec((cp, tm), lambda i: (0, i)),
        compiler_params=pltpu.CompilerParams(
            dimension_semantics=("parallel",),
            vmem_limit_bytes=vmem_limit),
    )(y_flat, scale.reshape(1, cp), shift.reshape(1, cp))

    # Glue: (CP, N*OHp*OWp) channel-major -> NCHW, dropping all padding.
    y = out_t[:cout].reshape(cout, n, ohp, owp)[:, :, :oh, :ow]
    return jnp.transpose(y, (1, 0, 2, 3))


# ---------------------------------------------------------------------------
# Pure-JAX reference for verification.
# ---------------------------------------------------------------------------
def _reference(x_nchw, weight_oihw, gamma, beta, *, stride, padding, act):
    y = lax.conv_general_dilated(
        x_nchw, weight_oihw, window_strides=(stride, stride),
        padding=[(padding, padding), (padding, padding)],
        dimension_numbers=("NCHW", "OIHW", "NCHW"))
    mean = jnp.mean(y, axis=(0, 2, 3), keepdims=True)
    var = jnp.mean((y - mean) ** 2, axis=(0, 2, 3), keepdims=True)
    y = (y - mean) * lax.rsqrt(var + BN_EPS)
    y = y * gamma.reshape(1, -1, 1, 1) + beta.reshape(1, -1, 1, 1)
    if act == "relu":
        y = jnp.maximum(y, 0.0)
    return y


if __name__ == "__main__":
    # Small shapes consistent with the module: N=2, Cin=4, H=W=16, Cout=8, 3x3, s=1, p=1.
    N, CIN, H, W = 2, 4, 16, 16
    COUT, KH, KW = 8, 3, 3
    STRIDE, PADDING, ACT = 1, 1, "relu"

    key = jax.random.PRNGKey(0)
    kx, kw_ = jax.random.split(key)

    x = jax.random.normal(kx, (N, CIN, H, W), dtype=jnp.float32)

    # kaiming_normal_ (fan_in, gain=sqrt(2)) for the conv weight; BN gamma=1, beta=0.
    fan_in = CIN * KH * KW
    std = (2.0 / fan_in) ** 0.5
    weight = std * jax.random.normal(kw_, (COUT, CIN, KH, KW), dtype=jnp.float32)
    gamma = jnp.ones((COUT,), dtype=jnp.float32)
    beta = jnp.zeros((COUT,), dtype=jnp.float32)

    ref = _reference(x, weight, gamma, beta, stride=STRIDE, padding=PADDING, act=ACT)

    # Tight-numerics path (f32 MXU inputs, f32 intermediate).
    out_f32 = conv_bn_layer(x, weight, gamma, beta, stride=STRIDE, padding=PADDING,
                            act=ACT, compute_dtype=jnp.float32, y_dtype=jnp.float32)
    out_f32 = jax.block_until_ready(out_f32)
    assert out_f32.shape == (N, COUT, H, W)
    assert jnp.allclose(out_f32, ref, atol=3e-4, rtol=3e-4), \
        float(jnp.max(jnp.abs(out_f32 - ref)))

    # Default fast path (bf16 MXU inputs + bf16 intermediate, f32 BN stats).
    out_bf16 = conv_bn_layer(x, weight, gamma, beta, stride=STRIDE, padding=PADDING,
                             act=ACT)
    out_bf16 = jax.block_until_ready(out_bf16)
    assert out_bf16.shape == (N, COUT, H, W)
    assert jnp.allclose(out_bf16, ref, atol=1e-1, rtol=1e-1), \
        float(jnp.max(jnp.abs(out_bf16 - ref)))

    print("KERNEL_OK")
</pallas_src>

<mosaic_0001>
module attributes {stable_mosaic.version = 11 : i64} {
  func.func @_conv_stats_kernel(%arg0: i32, %arg1: i32, %arg2: memref<1x18x18x4xf32, #tpu.memory_space<vmem>>, %arg3: memref<9x4x128xf32, #tpu.memory_space<vmem>>, %arg4: memref<256x128xf32, #tpu.memory_space<vmem>>, %arg5: memref<1x2x128xf32, #tpu.memory_space<vmem>>) attributes {dimension_semantics = [#tpu.dimension_semantics<parallel>, #tpu.dimension_semantics<parallel>], iteration_bounds = array<i64: 2, 1>, scalar_prefetch = 0 : i64, scratch_operands = 0 : i64, tpu.core_type = #tpu.core_type<tc>, window_params = [{transform_indices = @transform_0, window_bounds = array<i64: 1, 18, 18, 4>}, {pipeline_mode = #tpu.pipeline_mode<synchronous>, transform_indices = @transform_1, window_bounds = array<i64: 9, 4, 128>}, {transform_indices = @transform_2, window_bounds = array<i64: 256, 128>}, {transform_indices = @transform_3, window_bounds = array<i64: 1, 2, 128>}]} {
    %c16_i32 = arith.constant 16 : i32
    %0 = arith.muli %arg1, %c16_i32 : i32
    %1 = tpu.assume_multiple %0, 8 : i32
    %c0_i32 = arith.constant 0 : i32
    %2 = arith.addi %1, %c0_i32 : i32
    %c0 = arith.constant 0 : index
    %3 = arith.index_cast %2 : i32 to index
    %c0_0 = arith.constant 0 : index
    %c0_1 = arith.constant 0 : index
    %4 = vector.load %arg2[%c0, %3, %c0_0, %c0_1] : memref<1x18x18x4xf32, #tpu.memory_space<vmem>>, vector<1x16x16x4xf32>
    %5 = vector.shape_cast %4 : vector<1x16x16x4xf32> to vector<16x16x4xf32>
    %6 = vector.shape_cast %5 : vector<16x16x4xf32> to vector<256x4xf32>
    %c0_2 = arith.constant 0 : index
    %c0_3 = arith.constant 0 : index
    %c0_4 = arith.constant 0 : index
    %7 = vector.load %arg3[%c0_2, %c0_3, %c0_4] : memref<9x4x128xf32, #tpu.memory_space<vmem>>, vector<1x4x128xf32>
    %8 = vector.shape_cast %7 : vector<1x4x128xf32> to vector<4x128xf32>
    %cst = arith.constant dense<0.000000e+00> : vector<256x128xf32>
    %9 = tpu.matmul %6, %8, %cst {dimension_numbers = #tpu.dot_dimension_numbers<[1], [0], [0], [1], [0, 0, 1, 1], [], []>} : vector<256x4xf32>, vector<4x128xf32>, vector<256x128xf32> -> vector<256x128xf32>
    %c0_i32_5 = arith.constant 0 : i32
    %10 = arith.addi %1, %c0_i32_5 : i32
    %c0_6 = arith.constant 0 : index
    %11 = arith.index_cast %10 : i32 to index
    %c1 = arith.constant 1 : index
    %c0_7 = arith.constant 0 : index
    %12 = vector.load %arg2[%c0_6, %11, %c1, %c0_7] : memref<1x18x18x4xf32, #tpu.memory_space<vmem>>, vector<1x16x16x4xf32>
    %13 = vector.shape_cast %12 : vector<1x16x16x4xf32> to vector<16x16x4xf32>
    %14 = vector.shape_cast %13 : vector<16x16x4xf32> to vector<256x4xf32>
    %c1_8 = arith.constant 1 : index
    %c0_9 = arith.constant 0 : index
    %c0_10 = arith.constant 0 : index
    %15 = vector.load %arg3[%c1_8, %c0_9, %c0_10] : memref<9x4x128xf32, #tpu.memory_space<vmem>>, vector<1x4x128xf32>
    %16 = vector.shape_cast %15 : vector<1x4x128xf32> to vector<4x128xf32>
    %cst_11 = arith.constant dense<0.000000e+00> : vector<256x128xf32>
    %17 = tpu.matmul %14, %16, %cst_11 {dimension_numbers = #tpu.dot_dimension_numbers<[1], [0], [0], [1], [0, 0, 1, 1], [], []>} : vector<256x4xf32>, vector<4x128xf32>, vector<256x128xf32> -> vector<256x128xf32>
    %18 = arith.addf %9, %17 : vector<256x128xf32>
    %c0_i32_12 = arith.constant 0 : i32
    %19 = arith.addi %1, %c0_i32_12 : i32
    %c0_13 = arith.constant 0 : index
    %20 = arith.index_cast %19 : i32 to index
    %c2 = arith.constant 2 : index
    %c0_14 = arith.constant 0 : index
    %21 = vector.load %arg2[%c0_13, %20, %c2, %c0_14] : memref<1x18x18x4xf32, #tpu.memory_space<vmem>>, vector<1x16x16x4xf32>
    %22 = vector.shape_cast %21 : vector<1x16x16x4xf32> to vector<16x16x4xf32>
    %23 = vector.shape_cast %22 : vector<16x16x4xf32> to vector<256x4xf32>
    %c2_15 = arith.constant 2 : index
    %c0_16 = arith.constant 0 : index
    %c0_17 = arith.constant 0 : index
    %24 = vector.load %arg3[%c2_15, %c0_16, %c0_17] : memref<9x4x128xf32, #tpu.memory_space<vmem>>, vector<1x4x128xf32>
    %25 = vector.shape_cast %24 : vector<1x4x128xf32> to vector<4x128xf32>
    %cst_18 = arith.constant dense<0.000000e+00> : vector<256x128xf32>
    %26 = tpu.matmul %23, %25, %cst_18 {dimension_numbers = #tpu.dot_dimension_numbers<[1], [0], [0], [1], [0, 0, 1, 1], [], []>} : vector<256x4xf32>, vector<4x128xf32>, vector<256x128xf32> -> vector<256x128xf32>
    %27 = arith.addf %18, %26 : vector<256x128xf32>
    %c1_i32 = arith.constant 1 : i32
    %28 = arith.addi %1, %c1_i32 : i32
    %c0_19 = arith.constant 0 : index
    %29 = arith.index_cast %28 : i32 to index
    %c0_20 = arith.constant 0 : index
    %c0_21 = arith.constant 0 : index
    %30 = vector.load %arg2[%c0_19, %29, %c0_20, %c0_21] : memref<1x18x18x4xf32, #tpu.memory_space<vmem>>, vector<1x16x16x4xf32>
    %31 = vector.shape_cast %30 : vector<1x16x16x4xf32> to vector<16x16x4xf32>
    %32 = vector.shape_cast %31 : vector<16x16x4xf32> to vector<256x4xf32>
    %c3 = arith.constant 3 : index
    %c0_22 = arith.constant 0 : index
    %c0_23 = arith.constant 0 : index
    %33 = vector.load %arg3[%c3, %c0_22, %c0_23] : memref<9x4x128xf32, #tpu.memory_space<vmem>>, vector<1x4x128xf32>
    %34 = vector.shape_cast %33 : vector<1x4x128xf32> to vector<4x128xf32>
    %cst_24 = arith.constant dense<0.000000e+00> : vector<256x128xf32>
    %35 = tpu.matmul %32, %34, %cst_24 {dimension_numbers = #tpu.dot_dimension_numbers<[1], [0], [0], [1], [0, 0, 1, 1], [], []>} : vector<256x4xf32>, vector<4x128xf32>, vector<256x128xf32> -> vector<256x128xf32>
    %36 = arith.addf %27, %35 : vector<256x128xf32>
    %c1_i32_25 = arith.constant 1 : i32
    %37 = arith.addi %1, %c1_i32_25 : i32
    %c0_26 = arith.constant 0 : index
    %38 = arith.index_cast %37 : i32 to index
    %c1_27 = arith.constant 1 : index
    %c0_28 = arith.constant 0 : index
    %39 = vector.load %arg2[%c0_26, %38, %c1_27, %c0_28] : memref<1x18x18x4xf32, #tpu.memory_space<vmem>>, vector<1x16x16x4xf32>
    %40 = vector.shape_cast %39 : vector<1x16x16x4xf32> to vector<16x16x4xf32>
    %41 = vector.shape_cast %40 : vector<16x16x4xf32> to vector<256x4xf32>
    %c4 = arith.constant 4 : index
    %c0_29 = arith.constant 0 : index
    %c0_30 = arith.constant 0 : index
    %42 = vector.load %arg3[%c4, %c0_29, %c0_30] : memref<9x4x128xf32, #tpu.memory_space<vmem>>, vector<1x4x128xf32>
    %43 = vector.shape_cast %42 : vector<1x4x128xf32> to vector<4x128xf32>
    %cst_31 = arith.constant dense<0.000000e+00> : vector<256x128xf32>
    %44 = tpu.matmul %41, %43, %cst_31 {dimension_numbers = #tpu.dot_dimension_numbers<[1], [0], [0], [1], [0, 0, 1, 1], [], []>} : vector<256x4xf32>, vector<4x128xf32>, vector<256x128xf32> -> vector<256x128xf32>
    %45 = arith.addf %36, %44 : vector<256x128xf32>
    %c1_i32_32 = arith.constant 1 : i32
    %46 = arith.addi %1, %c1_i32_32 : i32
    %c0_33 = arith.constant 0 : index
    %47 = arith.index_cast %46 : i32 to index
    %c2_34 = arith.constant 2 : index
    %c0_35 = arith.constant 0 : index
    %48 = vector.load %arg2[%c0_33, %47, %c2_34, %c0_35] : memref<1x18x18x4xf32, #tpu.memory_space<vmem>>, vector<1x16x16x4xf32>
    %49 = vector.shape_cast %48 : vector<1x16x16x4xf32> to vector<16x16x4xf32>
    %50 = vector.shape_cast %49 : vector<16x16x4xf32> to vector<256x4xf32>
    %c5 = arith.constant 5 : index
    %c0_36 = arith.constant 0 : index
    %c0_37 = arith.constant 0 : index
    %51 = vector.load %arg3[%c5, %c0_36, %c0_37] : memref<9x4x128xf32, #tpu.memory_space<vmem>>, vector<1x4x128xf32>
    %52 = vector.shape_cast %51 : vector<1x4x128xf32> to vector<4x128xf32>
    %cst_38 = arith.constant dense<0.000000e+00> : vector<256x128xf32>
    %53 = tpu.matmul %50, %52, %cst_38 {dimension_numbers = #tpu.dot_dimension_numbers<[1], [0], [0], [1], [0, 0, 1, 1], [], []>} : vector<256x4xf32>, vector<4x128xf32>, vector<256x128xf32> -> vector<256x128xf32>
    %54 = arith.addf %45, %53 : vector<256x128xf32>
    %c2_i32 = arith.constant 2 : i32
    %55 = arith.addi %1, %c2_i32 : i32
    %c0_39 = arith.constant 0 : index
    %56 = arith.index_cast %55 : i32 to index
    %c0_40 = arith.constant 0 : index
    %c0_41 = arith.constant 0 : index
    %57 = vector.load %arg2[%c0_39, %56, %c0_40, %c0_41] : memref<1x18x18x4xf32, #tpu.memory_space<vmem>>, vector<1x16x16x4xf32>
    %58 = vector.shape_cast %57 : vector<1x16x16x4xf32> to vector<16x16x4xf32>
    %59 = vector.shape_cast %58 : vector<16x16x4xf32> to vector<256x4xf32>
    %c6 = arith.constant 6 : index
    %c0_42 = arith.constant 0 : index
    %c0_43 = arith.constant 0 : index
    %60 = vector.load %arg3[%c6, %c0_42, %c0_43] : memref<9x4x128xf32, #tpu.memory_space<vmem>>, vector<1x4x128xf32>
    %61 = vector.shape_cast %60 : vector<1x4x128xf32> to vector<4x128xf32>
    %cst_44 = arith.constant dense<0.000000e+00> : vector<256x128xf32>
    %62 = tpu.matmul %59, %61, %cst_44 {dimension_numbers = #tpu.dot_dimension_numbers<[1], [0], [0], [1], [0, 0, 1, 1], [], []>} : vector<256x4xf32>, vector<4x128xf32>, vector<256x128xf32> -> vector<256x128xf32>
    %63 = arith.addf %54, %62 : vector<256x128xf32>
    %c2_i32_45 = arith.constant 2 : i32
    %64 = arith.addi %1, %c2_i32_45 : i32
    %c0_46 = arith.constant 0 : index
    %65 = arith.index_cast %64 : i32 to index
    %c1_47 = arith.constant 1 : index
    %c0_48 = arith.constant 0 : index
    %66 = vector.load %arg2[%c0_46, %65, %c1_47, %c0_48] : memref<1x18x18x4xf32, #tpu.memory_space<vmem>>, vector<1x16x16x4xf32>
    %67 = vector.shape_cast %66 : vector<1x16x16x4xf32> to vector<16x16x4xf32>
    %68 = vector.shape_cast %67 : vector<16x16x4xf32> to vector<256x4xf32>
    %c7 = arith.constant 7 : index
    %c0_49 = arith.constant 0 : index
    %c0_50 = arith.constant 0 : index
    %69 = vector.load %arg3[%c7, %c0_49, %c0_50] : memref<9x4x128xf32, #tpu.memory_space<vmem>>, vector<1x4x128xf32>
    %70 = vector.shape_cast %69 : vector<1x4x128xf32> to vector<4x128xf32>
    %cst_51 = arith.constant dense<0.000000e+00> : vector<256x128xf32>
    %71 = tpu.matmul %68, %70, %cst_51 {dimension_numbers = #tpu.dot_dimension_numbers<[1], [0], [0], [1], [0, 0, 1, 1], [], []>} : vector<256x4xf32>, vector<4x128xf32>, vector<256x128xf32> -> vector<256x128xf32>
    %72 = arith.addf %63, %71 : vector<256x128xf32>
    %c2_i32_52 = arith.constant 2 : i32
    %73 = arith.addi %1, %c2_i32_52 : i32
    %c0_53 = arith.constant 0 : index
    %74 = arith.index_cast %73 : i32 to index
    %c2_54 = arith.constant 2 : index
    %c0_55 = arith.constant 0 : index
    %75 = vector.load %arg2[%c0_53, %74, %c2_54, %c0_55] : memref<1x18x18x4xf32, #tpu.memory_space<vmem>>, vector<1x16x16x4xf32>
    %76 = vector.shape_cast %75 : vector<1x16x16x4xf32> to vector<16x16x4xf32>
    %77 = vector.shape_cast %76 : vector<16x16x4xf32> to vector<256x4xf32>
    %c8 = arith.constant 8 : index
    %c0_56 = arith.constant 0 : index
    %c0_57 = arith.constant 0 : index
    %78 = vector.load %arg3[%c8, %c0_56, %c0_57] : memref<9x4x128xf32, #tpu.memory_space<vmem>>, vector<1x4x128xf32>
    %79 = vector.shape_cast %78 : vector<1x4x128xf32> to vector<4x128xf32>
    %cst_58 = arith.constant dense<0.000000e+00> : vector<256x128xf32>
    %80 = tpu.matmul %77, %79, %cst_58 {dimension_numbers = #tpu.dot_dimension_numbers<[1], [0], [0], [1], [0, 0, 1, 1], [], []>} : vector<256x4xf32>, vector<4x128xf32>, vector<256x128xf32> -> vector<256x128xf32>
    %81 = arith.addf %72, %80 : vector<256x128xf32>
    %c0_59 = arith.constant 0 : index
    %c0_60 = arith.constant 0 : index
    %82 = vector.load %arg4[%c0_59, %c0_60] : memref<256x128xf32, #tpu.memory_space<vmem>>, vector<256x128xf32>
    tpu.vector_store %arg4[%c0_59, %c0_60], %81 {strides = array<i32>} : memref<256x128xf32, #tpu.memory_space<vmem>>, vector<256x128xf32>,
    %cst_61 = arith.constant dense<0.000000e+00> : vector<128xf32>
    %83 = vector.multi_reduction <add>, %81, %cst_61 [0] : vector<256x128xf32> to vector<128xf32>
    %84 = vector.shape_cast %83 : vector<128xf32> to vector<1x128xf32>
    %c0_62 = arith.constant 0 : index
    %c0_63 = arith.constant 0 : index
    %c0_64 = arith.constant 0 : index
    %85 = vector.load %arg5[%c0_62, %c0_63, %c0_64] : memref<1x2x128xf32, #tpu.memory_space<vmem>>, vector<1x1x128xf32>
    %86 = vector.shape_cast %85 : vector<1x1x128xf32> to vector<1x128xf32>
    %87 = vector.shape_cast %84 : vector<1x128xf32> to vector<1x1x128xf32>
    tpu.vector_store %arg5[%c0_62, %c0_63, %c0_64], %87 {strides = array<i32>} : memref<1x2x128xf32, #tpu.memory_space<vmem>>, vector<1x1x128xf32>,
    %88 = arith.mulf %81, %81 : vector<256x128xf32>
    %cst_65 = arith.constant dense<0.000000e+00> : vector<128xf32>
    %89 = vector.multi_reduction <add>, %88, %cst_65 [0] : vector<256x128xf32> to vector<128xf32>
    %90 = vector.shape_cast %89 : vector<128xf32> to vector<1x128xf32>
    %c0_66 = arith.constant 0 : index
    %c1_67 = arith.constant 1 : index
    %c0_68 = arith.constant 0 : index
    %91 = vector.load %arg5[%c0_66, %c1_67, %c0_68] : memref<1x2x128xf32, #tpu.memory_space<vmem>>, vector<1x1x128xf32>
    %92 = vector.shape_cast %91 : vector<1x1x128xf32> to vector<1x128xf32>
    %93 = vector.shape_cast %90 : vector<1x128xf32> to vector<1x1x128xf32>
    tpu.vector_store %arg5[%c0_66, %c1_67, %c0_68], %93 {strides = array<i32>} : memref<1x2x128xf32, #tpu.memory_space<vmem>>, vector<1x1x128xf32>,
    return
  }
  func.func @transform_0(%arg0: i32, %arg1: i32) -> (i32, i32, i32, i32) {
    %c0_i32 = arith.constant 0 : i32
    %c0_i32_0 = arith.constant 0 : i32
    %c0_i32_1 = arith.constant 0 : i32
    %c0_i32_2 = arith.constant 0 : i32
    return %arg0, %c0_i32, %c0_i32_0, %c0_i32_1 : i32, i32, i32, i32
  }
  func.func @transform_1(%arg0: i32, %arg1: i32) -> (i32, i32, i32) {
    %c0_i32 = arith.constant 0 : i32
    %c0_i32_0 = arith.constant 0 : i32
    %c0_i32_1 = arith.constant 0 : i32
    %c0_i32_2 = arith.constant 0 : i32
    return %c0_i32, %c0_i32_0, %c0_i32_1 : i32, i32, i32
  }
  func.func @transform_2(%arg0: i32, %arg1: i32) -> (i32, i32) {
    %c1_i32 = arith.constant 1 : i32
    %0 = arith.muli %arg0, %c1_i32 : i32
    %1 = arith.addi %0, %arg1 : i32
    %c0_i32 = arith.constant 0 : i32
    %c0_i32_0 = arith.constant 0 : i32
    return %1, %c0_i32 : i32, i32
  }
  func.func @transform_3(%arg0: i32, %arg1: i32) -> (i32, i32, i32) {
    %c1_i32 = arith.constant 1 : i32
    %0 = arith.muli %arg0, %c1_i32 : i32
    %1 = arith.addi %0, %arg1 : i32
    %c0_i32 = arith.constant 0 : i32
    %c0_i32_0 = arith.constant 0 : i32
    %c0_i32_1 = arith.constant 0 : i32
    return %1, %c0_i32, %c0_i32_0 : i32, i32, i32
  }
}

</mosaic_0001>

<bundles_post_ra>
// kernel: tpu_custom_call.1
= control target key start
LH: loop header
LB: loop body
LE: loop exit
PB: predicated region body
PF: predicated region fallthrough
CT: control target
= control target key end

     0   :  { %9 = vsyncpa [#allocation3], 0  ;;  %s6789_s0 = inlined_call_operand.vmem [shape: f32[2,18,18,4], index: 0, kind: input, shape index: {}]   ;;  %s6790_s1 = inlined_call_operand.vmem [shape: f32[9,4,128], index: 1, kind: input, shape index: {}]   ;;  %s6791_s2 = inlined_call_operand.hbm [shape: f32[512,128], index: 2, kind: output, shape index: {0}]   ;;  %s6792_s3 = inlined_call_operand.hbm [shape: f32[2,2,128], index: 3, kind: output, shape index: {1}]  }
   0x1   :  { %11 = vsyncpa [#allocation3 + $0x1], 0 }
   0x2   :  { %12 = vsyncpa [#allocation5], 0 }
   0x3   :  { %14 = vsyncpa [#allocation5 + $0x1], 0  ;;  %s5660_s12 = smov 0   ;;  %s5662_s13 = smov 0  }
   0x4   :  { %s5664_s14 = smov 0   ;;  %s5666_s15 = smov 0  }
   0x5   :  { %s5668_s16 = smov 0   ;;  %s5670_s17 = smov 0  }
   0x6 LB: > { %s3943_s18 = sadd.s32 4294967295, %s5634_s17   ;;  %s3944_s19 = sadd.s32 4294967294, %s5634_s17   ;;  %s5634_s17 = sphi %s5670_s17, %s20_s17   ;;  %s5630_s16 = sphi %s5668_s16, %s6908_s16   ;;  %s5626_s15 = sphi %s5666_s15, %s6907_s15   ;;  %s5622_s14 = sphi %s5664_s14, %s6906_s14   ;;  %s5618_s13 = sphi %s5662_s13, %s6905_s13   ;;  %s5614_s12 = sphi %s5660_s12, %s6904_s12  }
   0x7   : > { %s32_s20 = sadd.s32 1, %s5630_s16  ;;  %s88_s21 = sadd.s32 1, %s5622_s14 }
   0x8   : > { %p34_p0 = scmp.ge.s32.totalorder %s32_s20, 2  ;;  %p98_p1 = scmp.ne.s32.totalorder %s5622_s14, %s5618_s13 }
   0x9   : > { %p99_p2 = scmp.eq.s32.totalorder %s3943_s18, 1  ;;  %p104_p3 = scmp.ne.s32.totalorder %s5618_s13, %s5614_s12 }
   0xa   : > { %s6910_s20 = smov (%p34_p0, %s32_s20), 0  ;;  %p105_p5 = scmp.eq.s32.totalorder %s3944_s19, 1 }
   0xb   : > { %p5700_p4 = por %p99_p2, %p98_p1  ;;  %s85_s23 = ssub.s32 %s5630_s16, %s6910_s20 }
   0xc   : > { %p3947_p6 = scmp.ge.s32.totalorder %s5634_s17, 1  ;;  %p86_p7 = scmp.eq.s32.totalorder %s85_s23, 0 }
   0xd   : > { %p5707_p8 = por %p105_p5, %p104_p3  ;;  %p162_p9 = scmp.lt.s32.totalorder %s5634_s17, 3 }
   0xe   : > { %s5713_s25 = scalar_select %p86_p7, %s5622_s14, %s88_s21  }
   0xf   : > { %p163_p10 = pnand %p3947_p6, %p162_p9 }
  0x11   : > { %166 = sbr.rel (%p163_p10) target bundleno = 575 (0x23f), region = 28 }
  0x18   : > { %v3951_v0 = vld [vmem:[%s6790_s1 + $0x4] sm:$0xf]  ;;  %vm366_vm0 = vcmask 1043456   ;;  %v5721_v1 = vld [vmem:[%s6790_s1 + $0x10] sm:$0xf]  ;;  %p191_p11 = scmp.lt.s32.totalorder %s5626_s15, 1 }
  0x19   : > { %4753 = vmatprep.subr.msk.mxu1 %vm366_vm0, %v3951_v0  ;;  %4953 = vmatprep.subr.msk.mxu0 %vm366_vm0, %v5721_v1  ;;  %v234_v2 = vld [vmem:[%s6790_s1] sm:$0xf]  ;;  %v4216_v3 = vld [vmem:[%s6790_s1 + $0x14] sm:$0xf]  ;;  %vm269_vm1 = vcmask 31744   ;;  %s6656_s5 = sand.u32 1, %s5618_s13  }
  0x1a   : > { %4754 = vmatpush3.msk.msra.mxu1 %vm366_vm0, %v3951_v0  ;;  %4954 = vmatpush3.msk.msra.mxu0 %vm366_vm0, %v5721_v1  ;;  %s192_s7 = scalar_select %p191_p11, %s5626_s15, 1  ;;  %v4282_v9 = vld [vmem:[%s6790_s1 + $0x18] sm:$0xf]  ;;  %v5761_v10 = vld [vmem:[%s6790_s1 + $0x8] sm:$0xf] }
  0x1b   : > { %4803 = vmatprep.subr.msk.mxu1 %vm366_vm0, %v234_v2  ;;  %5003 = vmatprep.subr.msk.mxu0 %vm366_vm0, %v4216_v3  ;;  %v5880_v28 = vld [vmem:[%s6790_s1 + $0x1c] sm:$0xf]  ;;  %v6043_v61 = vld [vmem:[%s6790_s1 + $0xc] sm:$0xf]  ;;  %s3948_s6 = sshll.u32 %s6656_s5, 8  ;;  %s3796_s19 = scalar_lea.sflag [#allocation3], %s6656_s5 }
  0x1c   : > { %s5461_s8 = smul.u32 432, %s192_s7  ;;  %s6663_s7 = scalar_lea.vmem [#allocation2], %s3948_s6 }
  0x1d   : > { %s3815_s9 = sshll.u32 %s6663_s7, 4  ;;  %s5636_s23 = smov [#allocation2]   ;;  %s6708_s9 = int_to_ptr.vmem [resolvable:$true] %s3815_s9 }
  0x1e   : > { %s5742_s11 = scalar_lea.vmem %s6789_s0, %s5461_s8  ;;  %s4455_s8 = sshll.u32 %s5626_s15, 12 }
  0x1f   : > { %v235_v4 = vld [vmem:[%s5742_s11 + $0x1] sm:$0xff]  ;;  %v4118_v5 = vld [vmem:[%s5742_s11 + $0x19] sm:$0xff]  ;;  %v236_v6 = vld [vmem:[%s5742_s11 + $0x9] sm:$0xff]  ;;  %s6706_s18 = scalar_lea.hbm %s6791_s2, %s4455_s8  ;;  %s5524_s21 = scalar_lea.vmem %s6708_s9, 4096 }
  0x20   : > { %4755 = vmatprep.mubr.msk.f32.mxu1 %vm269_vm1, %v235_v4  ;;  %4955 = vmatprep.mubr.msk.f32.mxu0 %vm269_vm1, %v4118_v5  ;;  %v4119_v7 = vld [vmem:[%s5742_s11 + $0x21] sm:$0xff]  ;;  %v5751_v8 = vld [vmem:[%s5742_s11 + $0x31] sm:$0xff]  ;;  %v5766_v11 = vld [vmem:[%s5742_s11 + $0x39] sm:$0xff]  ;;  %p5525_p12 = scmp.ne.s32.totalorder %s6708_s9, %s5524_s21  ;;  %s5528_s26 = sshll.u32 %s5636_s23, 4  ;;  %s5529_s26 = int_to_ptr.vmem [resolvable:$false] %s5528_s26 }
  0x21   : > { %4756 = vmatmul.mubr.msk.f32.vlgmr.msra.gmra.mrb[0].mxu1 %vm269_vm1, %v236_v6  ;;  %4956 = vmatmul.mubr.msk.f32.vlgmr.msra.gmra.mrb[0].mxu0 %vm269_vm1, %v4119_v7  ;;  %v5772_v12 = vld [vmem:[%s5742_s11 + $0x49] sm:$0xff]  ;;  %v5785_v13 = vld [vmem:[%s5742_s11 + $0x51] sm:$0xff]  ;;  %v5788_v14 = vld [vmem:[%s5742_s11 + $0x61] sm:$0xff]  ;;  %s5530_s27 = scalar_lea.vmem %s5529_s26, 8192  ;;  %p5531_p1 = scmp.lt.s32.totalorder %s6708_s9, %s5529_s26 }
  0x22   : > { %4804 = vmatpush3.msk.msra.mxu1 %vm366_vm0, %v234_v2  ;;  %5004 = vmatpush3.msk.msra.mxu0 %vm366_vm0, %v4216_v3  ;;  %v5799_v15 = vld [vmem:[%s5742_s11 + $0x69] sm:$0xff]  ;;  %v5802_v16 = vld [vmem:[%s5742_s11 + $0x79] sm:$0xff]  ;;  %v5813_v17 = vld [vmem:[%s5742_s11 + $0x81] sm:$0xff]  ;;  %p5526_p13 = pnand %p5525_p12, %p5700_p4  ;;  %p5532_p2 = scmp.lt.s32.totalorder %s5530_s27, %s5524_s21 }
  0x23   : > { %4758 = vmatprep.mubr.msk.f32.mxu1 %vm269_vm1, %v4118_v5  ;;  %4958 = vmatprep.mubr.msk.f32.mxu0 %vm269_vm1, %v5751_v8  ;;  %v5816_v18 = vld [vmem:[%s5742_s11 + $0x91] sm:$0xff]  ;;  %v5827_v19 = vld [vmem:[%s5742_s11 + $0x99] sm:$0xff]  ;;  %v5830_v20 = vld [vmem:[%s5742_s11 + $0xa9] sm:$0xff] }
  0x24   : > { %5053 = vmatprep.subr.msk.mxu0 %vm366_vm0, %v4282_v9  ;;  %4853 = vmatprep.subr.msk.mxu1 %vm366_vm0, %v5761_v10  ;;  %v5841_v21 = vld [vmem:[%s5742_s11 + $0xb1] sm:$0xff]  ;;  %v5844_v22 = vld [vmem:[%s5742_s11 + $0xc1] sm:$0xff]  ;;  %v5855_v23 = vld [vmem:[%s5742_s11 + $0xc9] sm:$0xff]  ;;  %p5527_p0 = pneg %p5526_p13  ;;  %p5533_p3 = por %p5532_p2, %p5531_p1 }
  0x25   : > { %4759 = vmatmul.mubr.msk.f32.gmra.mrb[2].mxu1 %vm269_vm1, %v4119_v7  ;;  %4959 = vmatmul.mubr.msk.f32.gmra.mrb[2].mxu0 %vm269_vm1, %v5766_v11  ;;  %v5858_v24 = vld [vmem:[%s5742_s11 + $0x1a] sm:$0xff]  ;;  %v5869_v25 = vld [vmem:[%s5742_s11 + $0x22] sm:$0xff]  ;;  %v5875_v27 = vld [vmem:[%s5742_s11 + $0x32] sm:$0xff] }
  0x26   : > { %4761 = vmatprep.mubr.msk.f32.mxu1 %vm269_vm1, %v5751_v8  ;;  %4961 = vmatprep.mubr.msk.f32.mxu0 %vm269_vm1, %v5772_v12  ;;  %v5872_v26 = vld [vmem:[%s5742_s11 + $0xd9] sm:$0xff]  ;;  %v5890_v29 = vld [vmem:[%s5742_s11 + $0xe1] sm:$0xff]  ;;  %v5898_v31 = vld [vmem:[%s5742_s11 + $0xf1] sm:$0xff]  ;;  %p5534_p5 = pnand %p5533_p3, %p5527_p0 }
  0x27   : > { %6840 = vst [vmem:[#allocation8_spill] sm:$0xff] %v5890_v29  ;;  %v5893_v30 = vld [vmem:[%s5742_s11 + $0x3a] sm:$0xff]  ;;  %6841 = vst [vmem:[#allocation9_spill] sm:$0xff] %v5898_v31  ;;  %v5901_v32 = vld [vmem:[%s5742_s11 + $0x4a] sm:$0xff] }
  0x28   : > { %v5914_v33 = vld [vmem:[%s5742_s11 + $0xf9] sm:$0xff]  ;;  %v5920_v35 = vld [vmem:[%s5742_s11 + $0x109] sm:$0xff]  ;;  %v5934_v37 = vld [vmem:[%s5742_s11 + $0x111] sm:$0xff] }
  0x29   : > { %4762 = vmatmul.mubr.msk.f32.gmra.mrb[4].mxu1 %vm269_vm1, %v5766_v11  ;;  %4962 = vmatmul.mubr.msk.f32.gmra.mrb[4].mxu0 %vm269_vm1, %v5785_v13  ;;  %6842 = vst [vmem:[#allocation10_spill] sm:$0xff] %v5914_v33  ;;  %v5917_v34 = vld [vmem:[%s5742_s11 + $0x52] sm:$0xff]  ;;  %6843 = vst [vmem:[#allocation11_spill] sm:$0xff] %v5920_v35  ;;  %v5923_v36 = vld [vmem:[%s5742_s11 + $0x62] sm:$0xff] }
  0x2a   : > { %4764 = vmatprep.mubr.msk.f32.mxu1 %vm269_vm1, %v5772_v12  ;;  %4964 = vmatprep.mubr.msk.f32.mxu0 %vm269_vm1, %v5788_v14  ;;  %6844 = vst [vmem:[#allocation12_spill] sm:$0xff] %v5934_v37  ;;  %v5937_v38 = vld [vmem:[%s5742_s11 + $0x6a] sm:$0xff]  ;;  %v5940_v39 = vld [vmem:[%s5742_s11 + $0x121] sm:$0xff]  ;;  %v5960_v43 = vld [vmem:[%s5742_s11 + $0x139] sm:$0xff] }
  0x2b   : > { %6845 = vst [vmem:[#allocation13_spill] sm:$0xff] %v5940_v39  ;;  %v5943_v40 = vld [vmem:[%s5742_s11 + $0x7a] sm:$0xff]  ;;  %v5954_v41 = vld [vmem:[%s5742_s11 + $0x129] sm:$0xff]  ;;  %6847 = vst [vmem:[#allocation15_spill] sm:$0xff] %v5960_v43 }
  0x2c   : > { %6846 = vst [vmem:[#allocation14_spill] sm:$0xff] %v5954_v41  ;;  %v5957_v42 = vld [vmem:[%s5742_s11 + $0x82] sm:$0xff]  ;;  %v5963_v44 = vld [vmem:[%s5742_s11 + $0x92] sm:$0xff]  ;;  %v5977_v46 = vld [vmem:[%s5742_s11 + $0x9a] sm:$0xff] }
  0x2d   : > { %4765 = vmatmul.mubr.msk.f32.gmra.mrb[6].mxu1 %vm269_vm1, %v5785_v13  ;;  %4965 = vmatmul.mubr.msk.f32.gmra.mrb[6].mxu0 %vm269_vm1, %v5799_v15  ;;  %v5974_v45 = vld [vmem:[%s5742_s11 + $0x141] sm:$0xff]  ;;  %v5980_v47 = vld [vmem:[%s5742_s11 + $0x151] sm:$0xff]  ;;  %v5994_v49 = vld [vmem:[%s5742_s11 + $0x159] sm:$0xff] }
  0x2e   : > { %4767 = vmatprep.mubr.msk.f32.mxu1 %vm269_vm1, %v5788_v14  ;;  %4967 = vmatprep.mubr.msk.f32.mxu0 %vm269_vm1, %v5802_v16  ;;  %6848 = vst [vmem:[#allocation16_spill] sm:$0xff] %v5974_v45  ;;  %6849 = vst [vmem:[#allocation17_spill] sm:$0xff] %v5980_v47  ;;  %v5983_v48 = vld [vmem:[%s5742_s11 + $0xaa] sm:$0xff]  ;;  %v5997_v50 = vld [vmem:[%s5742_s11 + $0xb2] sm:$0xff] }
  0x2f   : > { %6850 = vst [vmem:[#allocation18_spill] sm:$0xff] %v5994_v49  ;;  %v6000_v51 = vld [vmem:[%s5742_s11 + $0x169] sm:$0xff]  ;;  %v6014_v53 = vld [vmem:[%s5742_s11 + $0x171] sm:$0xff]  ;;  %v202_v55 = vld [vmem:[%s5742_s11] sm:$0xff] }
  0x30   : > { %6851 = vst [vmem:[#allocation19_spill] sm:$0xff] %v6000_v51  ;;  %v6003_v52 = vld [vmem:[%s5742_s11 + $0xc2] sm:$0xff]  ;;  %6852 = vst [vmem:[#allocation20_spill] sm:$0xff] %v6014_v53  ;;  %v6017_v54 = vld [vmem:[%s5742_s11 + $0xca] sm:$0xff] }
  0x31   : > { %4768 = vmatmul.mubr.msk.f32.gmra.mrb[8].mxu1 %vm269_vm1, %v5799_v15  ;;  %4968 = vmatmul.mubr.msk.f32.gmra.mrb[8].mxu0 %vm269_vm1, %v5813_v17  ;;  %v6021_v56 = vld [vmem:[%s5742_s11 + $0xda] sm:$0xff]  ;;  %v203_v57 = vld [vmem:[%s5742_s11 + $0x8] sm:$0xff]  ;;  %v6038_v60 = vld [vmem:[%s5742_s11 + $0xf2] sm:$0xff] }
  0x32   : > { %4770 = vmatprep.mubr.msk.f32.mxu1 %vm269_vm1, %v5802_v16  ;;  %4970 = vmatprep.mubr.msk.f32.mxu0 %vm269_vm1, %v5816_v18  ;;  %v6032_v58 = vld [vmem:[%s5742_s11 + $0xe2] sm:$0xff]  ;;  %v6035_v59 = vld [vmem:[%s5742_s11 + $0x18] sm:$0xff]  ;;  %v6061_v0 = vld [vmem:[%s5742_s11 + $0x30] sm:$0xff] }
  0x33   : > { %6853 = vst [vmem:[#allocation21_spill] sm:$0xff] %v6035_v59  ;;  %v6053_v62 = vld [vmem:[%s5742_s11 + $0x20] sm:$0xff]  ;;  %6855 = vst [vmem:[#allocation23_spill] sm:$0xff] %v6061_v0  ;;  %v6064_v2 = vld [vmem:[%s5742_s11 + $0x10a] sm:$0xff] }
  0x34   : > { %6854 = vst [vmem:[#allocation22_spill] sm:$0xff] %v6053_v62  ;;  %v6056_v63 = vld [vmem:[%s5742_s11 + $0xfa] sm:$0xff]  ;;  %v6080_v4 = vld [vmem:[%s5742_s11 + $0x112] sm:$0xff]  ;;  %v6083_v5 = vld [vmem:[%s5742_s11 + $0x48] sm:$0xff] }
  0x35   : > { %4771 = vmatmul.mubr.msk.f32.gmra.mrb[10].mxu1 %vm269_vm1, %v5813_v17  ;;  %4971 = vmatmul.mubr.msk.f32.gmra.mrb[10].mxu0 %vm269_vm1, %v5827_v19  ;;  %v6077_v3 = vld [vmem:[%s5742_s11 + $0x38] sm:$0xff]  ;;  %6857 = vst [vmem:[#allocation25_spill] sm:$0xff] %v6083_v5  ;;  %v6086_v6 = vld [vmem:[%s5742_s11 + $0x122] sm:$0xff]  ;;  %v6097_v7 = vld [vmem:[%s5742_s11 + $0x50] sm:$0xff] }
  0x36   : > { %4773 = vmatprep.mubr.msk.f32.mxu1 %vm269_vm1, %v5816_v18  ;;  %4973 = vmatprep.mubr.msk.f32.mxu0 %vm269_vm1, %v5830_v20  ;;  %6856 = vst [vmem:[#allocation24_spill] sm:$0xff] %v6077_v3  ;;  %6858 = vst [vmem:[#allocation26_spill] sm:$0xff] %v6097_v7 }
  0x39   : > { %4774 = vmatmul.mubr.msk.f32.gmra.mrb[12].mxu1 %vm269_vm1, %v5827_v19  ;;  %4974 = vmatmul.mubr.msk.f32.gmra.mrb[12].mxu0 %vm269_vm1, %v5841_v21 }
  0x3a   : > { %4776 = vmatprep.mubr.msk.f32.mxu1 %vm269_vm1, %v5830_v20  ;;  %4976 = vmatprep.mubr.msk.f32.mxu0 %vm269_vm1, %v5844_v22 }
  0x3d   : > { %4777 = vmatmul.mubr.msk.f32.gmra.mrb[14].mxu1 %vm269_vm1, %v5841_v21  ;;  %4977 = vmatmul.mubr.msk.f32.gmra.mrb[14].mxu0 %vm269_vm1, %v5855_v23 }
  0x3e   : > { %4779 = vmatprep.mubr.msk.f32.mxu1 %vm269_vm1, %v5844_v22  ;;  %5005 = vmatprep.mubr.msk.f32.mxu0 %vm269_vm1, %v5858_v24 }
  0x41   : > { %4780 = vmatmul.mubr.msk.f32.gmra.mrb[16].mxu1 %vm269_vm1, %v5855_v23  ;;  %5006 = vmatmul.mubr.msk.f32.vlgmr.msra.gmra.mrb[0].mxu0 %vm269_vm1, %v5869_v25 }
  0x42   : > { %5054 = vmatpush3.msk.msra.mxu0 %vm366_vm0, %v4282_v9  ;;  %4782 = vmatprep.mubr.msk.f32.mxu1 %vm269_vm1, %v5872_v26  ;;  %v6100_v9 = vld [vmem:[%s5742_s11 + $0x12a] sm:$0xff] }
  0x43   : > { %5008 = vmatprep.mubr.msk.f32.mxu0 %vm269_vm1, %v5875_v27  ;;  %5103 = vmatprep.subr.msk.mxu0 %vm366_vm0, %v5880_v28 }
  0x45   : > { %4783 = vmatmul.mubr.msk.f32.gmra.mrb[18].mxu1 %vm269_vm1, %v5890_v29  ;;  %5009 = vmatmul.mubr.msk.f32.gmra.mrb[2].mxu0 %vm269_vm1, %v5893_v30  ;;  %v6197_v29 = vld [vmem:[%s5742_s11 + $0xd8] sm:$0xff] }
  0x46   : > { %4785 = vmatprep.mubr.msk.f32.mxu1 %vm269_vm1, %v5898_v31  ;;  %5011 = vmatprep.mubr.msk.f32.mxu0 %vm269_vm1, %v5901_v32  ;;  %v6180_v31 = vld [vmem:[%s5742_s11 + $0x18a] sm:$0xff] }
  0x47   : > { %6869 = vst [vmem:[#allocation37_spill] sm:$0xff] %v6180_v31 }
  0x49   : > { %4786 = vmatmul.mubr.msk.f32.gmra.mrb[20].mxu1 %vm269_vm1, %v5914_v33  ;;  %5012 = vmatmul.mubr.msk.f32.gmra.mrb[4].mxu0 %vm269_vm1, %v5917_v34  ;;  %v6166_v33 = vld [vmem:[%s5742_s11 + $0x182] sm:$0xff] }
  0x4a   : > { %4788 = vmatprep.mubr.msk.f32.mxu1 %vm269_vm1, %v5920_v35  ;;  %5014 = vmatprep.mubr.msk.f32.mxu0 %vm269_vm1, %v5923_v36  ;;  %v6163_v35 = vld [vmem:[%s5742_s11 + $0xa8] sm:$0xff]  ;;  %6867 = vst [vmem:[#allocation35_spill] sm:$0xff] %v6166_v33 }
  0x4b   : > { %6866 = vst [vmem:[#allocation34_spill] sm:$0xff] %v6163_v35 }
  0x4d   : > { %4789 = vmatmul.mubr.msk.f32.gmra.mrb[22].mxu1 %vm269_vm1, %v5934_v37  ;;  %5015 = vmatmul.mubr.msk.f32.gmra.mrb[6].mxu0 %vm269_vm1, %v5937_v38  ;;  %v6160_v37 = vld [vmem:[%s5742_s11 + $0x172] sm:$0xff] }
  0x4e   : > { %4791 = vmatprep.mubr.msk.f32.mxu1 %vm269_vm1, %v5940_v39  ;;  %5017 = vmatprep.mubr.msk.f32.mxu0 %vm269_vm1, %v5943_v40  ;;  %v6157_v39 = vld [vmem:[%s5742_s11 + $0x98] sm:$0xff]  ;;  %6865 = vst [vmem:[#allocation33_spill] sm:$0xff] %v6160_v37 }
  0x4f   : > { %6864 = vst [vmem:[#allocation32_spill] sm:$0xff] %v6157_v39 }
  0x51   : > { %4792 = vmatmul.mubr.msk.f32.gmra.mrb[24].mxu1 %vm269_vm1, %v5954_v41  ;;  %5018 = vmatmul.mubr.msk.f32.gmra.mrb[8].mxu0 %vm269_vm1, %v5957_v42  ;;  %v6146_v41 = vld [vmem:[%s5742_s11 + $0x16a] sm:$0xff] }
  0x52   : > { %4794 = vmatprep.mubr.msk.f32.mxu1 %vm269_vm1, %v5960_v43  ;;  %5020 = vmatprep.mubr.msk.f32.mxu0 %vm269_vm1, %v5963_v44  ;;  %v6143_v43 = vld [vmem:[%s5742_s11 + $0x90] sm:$0xff] }
  0x53   : > { %6863 = vst [vmem:[#allocation31_spill] sm:$0xff] %v6143_v43 }
  0x55   : > { %4795 = vmatmul.mubr.msk.f32.gmra.mrb[26].mxu1 %vm269_vm1, %v5974_v45  ;;  %5021 = vmatmul.mubr.msk.f32.gmra.mrb[10].mxu0 %vm269_vm1, %v5977_v46  ;;  %v6140_v45 = vld [vmem:[%s5742_s11 + $0x15a] sm:$0xff] }
  0x56   : > { %4797 = vmatprep.mubr.msk.f32.mxu1 %vm269_vm1, %v5980_v47  ;;  %5023 = vmatprep.mubr.msk.f32.mxu0 %vm269_vm1, %v5983_v48  ;;  %v6137_v47 = vld [vmem:[%s5742_s11 + $0x80] sm:$0xff] }
  0x57   : > { %6862 = vst [vmem:[#allocation30_spill] sm:$0xff] %v6137_v47 }
  0x59   : > { %4798 = vmatmul.mubr.msk.f32.gmra.mrb[28].mxu1 %vm269_vm1, %v5994_v49  ;;  %5024 = vmatmul.mubr.msk.f32.gmra.mrb[12].mxu0 %vm269_vm1, %v5997_v50  ;;  %v6126_v49 = vld [vmem:[%s5742_s11 + $0x152] sm:$0xff] }
  0x5a   : > { %4800 = vmatprep.mubr.msk.f32.mxu1 %vm269_vm1, %v6000_v51  ;;  %5026 = vmatprep.mubr.msk.f32.mxu0 %vm269_vm1, %v6003_v52  ;;  %v6123_v51 = vld [vmem:[%s5742_s11 + $0x78] sm:$0xff] }
  0x5b   : > { %6861 = vst [vmem:[#allocation29_spill] sm:$0xff] %v6123_v51 }
  0x5d   : > { %4801 = vmatmul.mubr.msk.f32.gmra.mrb[30].mxu1 %vm269_vm1, %v6014_v53  ;;  %5027 = vmatmul.mubr.msk.f32.gmra.mrb[14].mxu0 %vm269_vm1, %v6017_v54  ;;  %v6120_v53 = vld [vmem:[%s5742_s11 + $0x142] sm:$0xff] }
  0x5e   : > { %4805 = vmatprep.mubr.msk.f32.mxu1 %vm269_vm1, %v202_v55  ;;  %5029 = vmatprep.mubr.msk.f32.mxu0 %vm269_vm1, %v6021_v56  ;;  %v6106_v55 = vld [vmem:[%s5742_s11 + $0x13a] sm:$0xff] }
  0x61   : > { %4806 = vmatmul.mubr.msk.f32.vlgmr.msra.gmra.mrb[0].mxu1 %vm269_vm1, %v203_v57  ;;  %5030 = vmatmul.mubr.msk.f32.gmra.mrb[16].mxu0 %vm269_vm1, %v6032_v58  ;;  %v6117_v57 = vld [vmem:[%s5742_s11 + $0x68] sm:$0xff] }
  0x62   : > { %4854 = vmatpush3.msk.msra.mxu1 %vm366_vm0, %v5761_v10  ;;  %4808 = vmatprep.mubr.msk.f32.mxu1 %vm269_vm1, %v6035_v59  ;;  %v6103_v10 = vld [vmem:[%s5742_s11 + $0x60] sm:$0xff]  ;;  %6860 = vst [vmem:[#allocation28_spill] sm:$0xff] %v6117_v57 }
  0x63   : > { %5032 = vmatprep.mubr.msk.f32.mxu0 %vm269_vm1, %v6038_v60  ;;  %4903 = vmatprep.subr.msk.mxu1 %vm366_vm0, %v6043_v61  ;;  %6859 = vst [vmem:[#allocation27_spill] sm:$0xff] %v6103_v10  ;;  %v6183_v59 = vld [vmem:[%s5742_s11 + $0xc0] sm:$0xff] }
  0x65   : > { %4809 = vmatmul.mubr.msk.f32.gmra.mrb[2].mxu1 %vm269_vm1, %v6053_v62  ;;  %5033 = vmatmul.mubr.msk.f32.gmra.mrb[18].mxu0 %vm269_vm1, %v6056_v63  ;;  %v6177_v62 = vld [vmem:[%s5742_s11 + $0xb0] sm:$0xff] }
  0x66   : > { %4811 = vmatprep.mubr.msk.f32.mxu1 %vm269_vm1, %v6061_v0  ;;  %5035 = vmatprep.mubr.msk.f32.mxu0 %vm269_vm1, %v6064_v2  ;;  %6868 = vst [vmem:[#allocation36_spill] sm:$0xff] %v6177_v62 }
  0x69   : > { %4812 = vmatmul.mubr.msk.f32.gmra.mrb[4].mxu1 %vm269_vm1, %v6077_v3  ;;  %5036 = vmatmul.mubr.msk.f32.gmra.mrb[20].mxu0 %vm269_vm1, %v6080_v4 }
  0x6a   : > { %4814 = vmatprep.mubr.msk.f32.mxu1 %vm269_vm1, %v6083_v5  ;;  %5038 = vmatprep.mubr.msk.f32.mxu0 %vm269_vm1, %v6086_v6 }
  0x6d   : > { %4815 = vmatmul.mubr.msk.f32.gmra.mrb[6].mxu1 %vm269_vm1, %v6097_v7  ;;  %5039 = vmatmul.mubr.msk.f32.gmra.mrb[22].mxu0 %vm269_vm1, %v6100_v9 }
  0x6e   : > { %4817 = vmatprep.mubr.msk.f32.mxu1 %vm269_vm1, %v6103_v10  ;;  %5041 = vmatprep.mubr.msk.f32.mxu0 %vm269_vm1, %v6106_v55 }
  0x71   : > { %4818 = vmatmul.mubr.msk.f32.gmra.mrb[8].mxu1 %vm269_vm1, %v6117_v57  ;;  %5042 = vmatmul.mubr.msk.f32.gmra.mrb[24].mxu0 %vm269_vm1, %v6120_v53 }
  0x72   : > { %4820 = vmatprep.mubr.msk.f32.mxu1 %vm269_vm1, %v6123_v51  ;;  %5044 = vmatprep.mubr.msk.f32.mxu0 %vm269_vm1, %v6126_v49 }
  0x75   : > { %4821 = vmatmul.mubr.msk.f32.gmra.mrb[10].mxu1 %vm269_vm1, %v6137_v47  ;;  %5045 = vmatmul.mubr.msk.f32.gmra.mrb[26].mxu0 %vm269_vm1, %v6140_v45 }
  0x76   : > { %4823 = vmatprep.mubr.msk.f32.mxu1 %vm269_vm1, %v6143_v43  ;;  %5047 = vmatprep.mubr.msk.f32.mxu0 %vm269_vm1, %v6146_v41 }
  0x79   : > { %4824 = vmatmul.mubr.msk.f32.gmra.mrb[12].mxu1 %vm269_vm1, %v6157_v39  ;;  %5048 = vmatmul.mubr.msk.f32.gmra.mrb[28].mxu0 %vm269_vm1, %v6160_v37  ;;  %v6202_v37 = vld [vmem:[%s6790_s1 + $0x20] sm:$0xf] }
  0x7a   : > { %4826 = vmatprep.mubr.msk.f32.mxu1 %vm269_vm1, %v6163_v35  ;;  %5050 = vmatprep.mubr.msk.f32.mxu0 %vm269_vm1, %v6166_v33  ;;  %v6194_v33 = vld [vmem:[%s5742_s11 + $0xc8] sm:$0xff] }
  0x7b   : > { %6870 = vst [vmem:[#allocation38_spill] sm:$0xff] %v6194_v33 }
  0x7d   : > { %4827 = vmatmul.mubr.msk.f32.gmra.mrb[14].mxu1 %vm269_vm1, %v6177_v62  ;;  %5051 = vmatmul.mubr.msk.f32.gmra.mrb[30].mxu0 %vm269_vm1, %v6180_v31  ;;  %v6213_v31 = vld [vmem:[%s5742_s11 + $0xe0] sm:$0xff] }
  0x7e   : > { %4829 = vmatprep.mubr.msk.f32.mxu1 %vm269_vm1, %v6183_v59  ;;  %5055 = vmatprep.mubr.msk.f32.mxu0 %vm269_vm1, %v6061_v0  ;;  %v6218_v0 = vld [vmem:[%s5742_s11 + $0xf0] sm:$0xff] }
  0x81   : > { %4830 = vmatmul.mubr.msk.f32.gmra.mrb[16].mxu1 %vm269_vm1, %v6194_v33  ;;  %5056 = vmatmul.mubr.msk.f32.vlgmr.msra.gmra.mrb[0].mxu0 %vm269_vm1, %v6077_v3  ;;  %v919_v3 = vld [vmem:[%s5742_s11 + $0x2] sm:$0xff] }
  0x82   : > { %5104 = vmatpush3.msk.msra.mxu0 %vm366_vm0, %v5880_v28  ;;  %4832 = vmatprep.mubr.msk.f32.mxu1 %vm269_vm1, %v6197_v29  ;;  %v6231_v28 = vld [vmem:[%s5742_s11 + $0xf8] sm:$0xff] }
  0x83   : > { %5058 = vmatprep.mubr.msk.f32.mxu0 %vm269_vm1, %v6083_v5  ;;  %5153 = vmatprep.subr.msk.mxu0 %vm366_vm0, %v6202_v37  ;;  %v6234_v5 = vld [vmem:[%s5742_s11 + $0x108] sm:$0xff] }
  0x85   : > { %4833 = vmatmul.mubr.msk.f32.gmra.mrb[18].mxu1 %vm269_vm1, %v6213_v31  ;;  %5059 = vmatmul.mubr.msk.f32.gmra.mrb[2].mxu0 %vm269_vm1, %v6097_v7  ;;  %v6245_v7 = vld [vmem:[%s5742_s11 + $0x110] sm:$0xff] }
  0x86   : > { %4835 = vmatprep.mubr.msk.f32.mxu1 %vm269_vm1, %v6218_v0  ;;  %5061 = vmatprep.mubr.msk.f32.mxu0 %vm269_vm1, %v6103_v10  ;;  %v6248_v10 = vld [vmem:[%s5742_s11 + $0x120] sm:$0xff] }
  0x89   : > { %4836 = vmatmul.mubr.msk.f32.gmra.mrb[20].mxu1 %vm269_vm1, %v6231_v28  ;;  %5062 = vmatmul.mubr.msk.f32.gmra.mrb[4].mxu0 %vm269_vm1, %v6117_v57  ;;  %v6259_v57 = vld [vmem:[%s5742_s11 + $0x128] sm:$0xff] }
  0x8a   : > { %4838 = vmatprep.mubr.msk.f32.mxu1 %vm269_vm1, %v6234_v5  ;;  %5064 = vmatprep.mubr.msk.f32.mxu0 %vm269_vm1, %v6123_v51  ;;  %v6262_v51 = vld [vmem:[%s5742_s11 + $0x138] sm:$0xff] }
  0x8d   : > { %4839 = vmatmul.mubr.msk.f32.gmra.mrb[22].mxu1 %vm269_vm1, %v6245_v7  ;;  %5065 = vmatmul.mubr.msk.f32.gmra.mrb[6].mxu0 %vm269_vm1, %v6137_v47  ;;  %v6273_v47 = vld [vmem:[%s5742_s11 + $0x140] sm:$0xff] }
  0x8e   : > { %4841 = vmatprep.mubr.msk.f32.mxu1 %vm269_vm1, %v6248_v10  ;;  %5067 = vmatprep.mubr.msk.f32.mxu0 %vm269_vm1, %v6143_v43  ;;  %v6276_v43 = vld [vmem:[%s5742_s11 + $0x150] sm:$0xff] }
  0x91   : > { %4842 = vmatmul.mubr.msk.f32.gmra.mrb[24].mxu1 %vm269_vm1, %v6259_v57  ;;  %5068 = vmatmul.mubr.msk.f32.gmra.mrb[8].mxu0 %vm269_vm1, %v6157_v39  ;;  %v6287_v39 = vld [vmem:[%s5742_s11 + $0x158] sm:$0xff] }
  0x92   : > { %4844 = vmatprep.mubr.msk.f32.mxu1 %vm269_vm1, %v6262_v51  ;;  %5070 = vmatprep.mubr.msk.f32.mxu0 %vm269_vm1, %v6163_v35  ;;  %v6290_v35 = vld [vmem:[%s5742_s11 + $0x168] sm:$0xff] }
  0x95   : > { %4845 = vmatmul.mubr.msk.f32.gmra.mrb[26].mxu1 %vm269_vm1, %v6273_v47  ;;  %5071 = vmatmul.mubr.msk.f32.gmra.mrb[10].mxu0 %vm269_vm1, %v6177_v62  ;;  %v6301_v62 = vld [vmem:[%s5742_s11 + $0x170] sm:$0xff] }
  0x96   : > { %4847 = vmatprep.mubr.msk.f32.mxu1 %vm269_vm1, %v6276_v43  ;;  %5073 = vmatprep.mubr.msk.f32.mxu0 %vm269_vm1, %v6183_v59 }
  0x99   : > { %4848 = vmatmul.mubr.msk.f32.gmra.mrb[28].mxu1 %vm269_vm1, %v6287_v39  ;;  %5074 = vmatmul.mubr.msk.f32.gmra.mrb[12].mxu0 %vm269_vm1, %v6194_v33  ;;  %v920_v33 = vld [vmem:[%s5742_s11 + $0xa] sm:$0xff] }
  0x9a   : > { %4850 = vmatprep.mubr.msk.f32.mxu1 %vm269_vm1, %v6290_v35  ;;  %5076 = vmatprep.mubr.msk.f32.mxu0 %vm269_vm1, %v6197_v29 }
  0x9d   : > { %4851 = vmatmul.mubr.msk.f32.gmra.mrb[30].mxu1 %vm269_vm1, %v6301_v62  ;;  %5077 = vmatmul.mubr.msk.f32.gmra.mrb[14].mxu0 %vm269_vm1, %v6213_v31 }
  0x9e   : > { %4855 = vmatprep.mubr.msk.f32.mxu1 %vm269_vm1, %v919_v3  ;;  %5079 = vmatprep.mubr.msk.f32.mxu0 %vm269_vm1, %v6218_v0  ;;  %v6887_v3 = vld [vmem:[#allocation28_spill] sm:$0xff] }
  0xa1   : > { %4856 = vmatmul.mubr.msk.f32.vlgmr.msra.gmra.mrb[0].mxu1 %vm269_vm1, %v920_v33  ;;  %5080 = vmatmul.mubr.msk.f32.gmra.mrb[16].mxu0 %vm269_vm1, %v6231_v28  ;;  %v4280_v33 = vld [vmem:[%s5742_s11 + $0x198] sm:$0xff] }
  0xa2   : > { %4904 = vmatpush3.msk.msra.mxu1 %vm366_vm0, %v6043_v61  ;;  %4858 = vmatprep.mubr.msk.f32.mxu1 %vm269_vm1, %v5858_v24  ;;  %v6356_v24 = vld [vmem:[%s5742_s11 + $0x180] sm:$0xff] }
  0xa3   : > { %5082 = vmatprep.mubr.msk.f32.mxu0 %vm269_vm1, %v6234_v5  ;;  %5203 = vmatprep.subr.msk.mxu1 %vm366_vm0, %v5721_v1  ;;  %v4281_v61 = vld [vmem:[%s5742_s11 + $0x1a0] sm:$0xff] }
  0xa5   : > { %4859 = vmatmul.mubr.msk.f32.gmra.mrb[2].mxu1 %vm269_vm1, %v5869_v25  ;;  %5083 = vmatmul.mubr.msk.f32.gmra.mrb[18].mxu0 %vm269_vm1, %v6245_v7  ;;  %v6367_v25 = vld [vmem:[%s5742_s11 + $0x188] sm:$0xff] }
  0xa6   : > { %4861 = vmatprep.mubr.msk.f32.mxu1 %vm269_vm1, %v5875_v27  ;;  %5085 = vmatprep.mubr.msk.f32.mxu0 %vm269_vm1, %v6248_v10 }
  0xa9   : > { %4862 = vmatmul.mubr.msk.f32.gmra.mrb[4].mxu1 %vm269_vm1, %v5893_v30  ;;  %5086 = vmatmul.mubr.msk.f32.gmra.mrb[20].mxu0 %vm269_vm1, %v6259_v57 }
  0xaa   : > { %4864 = vmatprep.mubr.msk.f32.mxu1 %vm269_vm1, %v5901_v32  ;;  %5088 = vmatprep.mubr.msk.f32.mxu0 %vm269_vm1, %v6262_v51 }
  0xad   : > { %4865 = vmatmul.mubr.msk.f32.gmra.mrb[6].mxu1 %vm269_vm1, %v5917_v34  ;;  %5089 = vmatmul.mubr.msk.f32.gmra.mrb[22].mxu0 %vm269_vm1, %v6273_v47 }
  0xae   : > { %4867 = vmatprep.mubr.msk.f32.mxu1 %vm269_vm1, %v5923_v36  ;;  %5091 = vmatprep.mubr.msk.f32.mxu0 %vm269_vm1, %v6276_v43 }
  0xb1   : > { %4868 = vmatmul.mubr.msk.f32.gmra.mrb[8].mxu1 %vm269_vm1, %v5937_v38  ;;  %5092 = vmatmul.mubr.msk.f32.gmra.mrb[24].mxu0 %vm269_vm1, %v6287_v39 }
  0xb2   : > { %4870 = vmatprep.mubr.msk.f32.mxu1 %vm269_vm1, %v5943_v40  ;;  %5094 = vmatprep.mubr.msk.f32.mxu0 %vm269_vm1, %v6290_v35 }
  0xb5   : > { %4871 = vmatmul.mubr.msk.f32.gmra.mrb[10].mxu1 %vm269_vm1, %v5957_v42  ;;  %5095 = vmatmul.mubr.msk.f32.gmra.mrb[26].mxu0 %vm269_vm1, %v6301_v62 }
  0xb6   : > { %4873 = vmatprep.mubr.msk.f32.mxu1 %vm269_vm1, %v5963_v44  ;;  %5097 = vmatprep.mubr.msk.f32.mxu0 %vm269_vm1, %v6356_v24 }
  0xb9   : > { %4874 = vmatmul.mubr.msk.f32.gmra.mrb[12].mxu1 %vm269_vm1, %v5977_v46  ;;  %5098 = vmatmul.mubr.msk.f32.gmra.mrb[28].mxu0 %vm269_vm1, %v6367_v25 }
  0xba   : > { %4876 = vmatprep.mubr.msk.f32.mxu1 %vm269_vm1, %v5983_v48  ;;  %5100 = vmatprep.mubr.msk.f32.mxu0 %vm269_vm1, %v4280_v33  ;;  %v6888_v33 = vld [vmem:[#allocation16_spill] sm:$0xff] }
  0xbd   : > { %4877 = vmatmul.mubr.msk.f32.gmra.mrb[14].mxu1 %vm269_vm1, %v5997_v50  ;;  %5101 = vmatmul.mubr.msk.f32.gmra.mrb[30].mxu0 %vm269_vm1, %v4281_v61  ;;  %v6889_v61 = vld [vmem:[#allocation29_spill] sm:$0xff] }
  0xbe   : > { %4879 = vmatprep.mubr.msk.f32.mxu1 %vm269_vm1, %v6003_v52  ;;  %5105 = vmatprep.mubr.msk.f32.mxu0 %vm269_vm1, %v5751_v8  ;;  %v6871_v8 = vld [vmem:[#allocation33_spill] sm:$0xff] }
  0xc1   : > { %4880 = vmatmul.mubr.msk.f32.gmra.mrb[16].mxu1 %vm269_vm1, %v6017_v54  ;;  %5106 = vmatmul.mubr.msk.f32.vlgmr.msra.gmra.mrb[0].mxu0 %vm269_vm1, %v5766_v11  ;;  %v6872_v11 = vld [vmem:[#allocation8_spill] sm:$0xff] }
  0xc2   : > { %5154 = vmatpush3.msk.msra.mxu0 %vm366_vm0, %v6202_v37  ;;  %4882 = vmatprep.mubr.msk.f32.mxu1 %vm269_vm1, %v6021_v56  ;;  %v6886_v37 = vld [vmem:[#allocation15_spill] sm:$0xff] }
  0xc3   : > { %5108 = vmatprep.mubr.msk.f32.mxu0 %vm269_vm1, %v5772_v12  ;;  %v6873_v12 = vld [vmem:[#allocation21_spill] sm:$0xff] }
  0xc5   : > { %4883 = vmatmul.mubr.msk.f32.gmra.mrb[18].mxu1 %vm269_vm1, %v6032_v58  ;;  %5109 = vmatmul.mubr.msk.f32.gmra.mrb[2].mxu0 %vm269_vm1, %v5785_v13  ;;  %v6874_v13 = vld [vmem:[#allocation9_spill] sm:$0xff] }
  0xc6   : > { %4885 = vmatprep.mubr.msk.f32.mxu1 %vm269_vm1, %v6038_v60  ;;  %5111 = vmatprep.mubr.msk.f32.mxu0 %vm269_vm1, %v5788_v14  ;;  %v6875_v14 = vld [vmem:[#allocation22_spill] sm:$0xff] }
  0xc9   : > { %4886 = vmatmul.mubr.msk.f32.gmra.mrb[20].mxu1 %vm269_vm1, %v6056_v63  ;;  %5112 = vmatmul.mubr.msk.f32.gmra.mrb[4].mxu0 %vm269_vm1, %v5799_v15  ;;  %v6876_v15 = vld [vmem:[#allocation10_spill] sm:$0xff] }
  0xca   : > { %4888 = vmatprep.mubr.msk.f32.mxu1 %vm269_vm1, %v6064_v2  ;;  %5114 = vmatprep.mubr.msk.f32.mxu0 %vm269_vm1, %v5802_v16  ;;  %v6877_v16 = vld [vmem:[#allocation23_spill] sm:$0xff] }
  0xcd   : > { %4889 = vmatmul.mubr.msk.f32.gmra.mrb[22].mxu1 %vm269_vm1, %v6080_v4  ;;  %5115 = vmatmul.mubr.msk.f32.gmra.mrb[6].mxu0 %vm269_vm1, %v5813_v17  ;;  %v6878_v17 = vld [vmem:[#allocation11_spill] sm:$0xff] }
  0xce   : > { %4891 = vmatprep.mubr.msk.f32.mxu1 %vm269_vm1, %v6086_v6  ;;  %5117 = vmatprep.mubr.msk.f32.mxu0 %vm269_vm1, %v5816_v18  ;;  %v6879_v18 = vld [vmem:[#allocation24_spill] sm:$0xff] }
  0xd1   : > { %4892 = vmatmul.mubr.msk.f32.gmra.mrb[24].mxu1 %vm269_vm1, %v6100_v9  ;;  %5118 = vmatmul.mubr.msk.f32.gmra.mrb[8].mxu0 %vm269_vm1, %v5827_v19  ;;  %v6880_v19 = vld [vmem:[#allocation12_spill] sm:$0xff] }
  0xd2   : > { %4894 = vmatprep.mubr.msk.f32.mxu1 %vm269_vm1, %v6106_v55  ;;  %5120 = vmatprep.mubr.msk.f32.mxu0 %vm269_vm1, %v5830_v20  ;;  %v6881_v20 = vld [vmem:[#allocation25_spill] sm:$0xff] }
  0xd5   : > { %4895 = vmatmul.mubr.msk.f32.gmra.mrb[26].mxu1 %vm269_vm1, %v6120_v53  ;;  %5121 = vmatmul.mubr.msk.f32.gmra.mrb[10].mxu0 %vm269_vm1, %v5841_v21  ;;  %v6882_v21 = vld [vmem:[#allocation13_spill] sm:$0xff] }
  0xd6   : > { %4897 = vmatprep.mubr.msk.f32.mxu1 %vm269_vm1, %v6126_v49  ;;  %5123 = vmatprep.mubr.msk.f32.mxu0 %vm269_vm1, %v5844_v22  ;;  %v6884_v22 = vld [vmem:[#allocation14_spill] sm:$0xff] }
  0xd9   : > { %4898 = vmatmul.mubr.msk.f32.gmra.mrb[28].mxu1 %vm269_vm1, %v6140_v45  ;;  %5124 = vmatmul.mubr.msk.f32.gmra.mrb[12].mxu0 %vm269_vm1, %v5855_v23  ;;  %v6885_v23 = vld [vmem:[#allocation27_spill] sm:$0xff] }
  0xda   : > { %4900 = vmatprep.mubr.msk.f32.mxu1 %vm269_vm1, %v6146_v41  ;;  %5126 = vmatprep.mubr.msk.f32.mxu0 %vm269_vm1, %v5872_v26 }
  0xdd   : > { %4901 = vmatmul.mubr.msk.f32.gmra.mrb[30].mxu1 %vm269_vm1, %v6871_v8  ;;  %5127 = vmatmul.mubr.msk.f32.gmra.mrb[14].mxu0 %vm269_vm1, %v6872_v11  ;;  %v6898_v8 = vld [vmem:[#allocation36_spill] sm:$0xff] }
  0xde   : > { %4905 = vmatprep.mubr.msk.f32.mxu1 %vm269_vm1, %v6873_v12  ;;  %5129 = vmatprep.mubr.msk.f32.mxu0 %vm269_vm1, %v6874_v13  ;;  %v6890_v12 = vld [vmem:[#allocation17_spill] sm:$0xff] }
  0xe1   : > { %4906 = vmatmul.mubr.msk.f32.vlgmr.msra.gmra.mrb[0].mxu1 %vm269_vm1, %v6875_v14  ;;  %5130 = vmatmul.mubr.msk.f32.gmra.mrb[16].mxu0 %vm269_vm1, %v6876_v15  ;;  %v6891_v14 = vld [vmem:[#allocation30_spill] sm:$0xff] }
  0xe2   : > { %5204 = vmatpush3.msk.msra.mxu1 %vm366_vm0, %v5721_v1  ;;  %4908 = vmatprep.mubr.msk.f32.mxu1 %vm269_vm1, %v6877_v16  ;;  %v6883_v1 = vld [vmem:[#allocation26_spill] sm:$0xff] }
  0xe3   : > { %5132 = vmatprep.mubr.msk.f32.mxu0 %vm269_vm1, %v6878_v17  ;;  %v6892_v16 = vld [vmem:[#allocation18_spill] sm:$0xff] }
  0xe5   : > { %4909 = vmatmul.mubr.msk.f32.gmra.mrb[2].mxu1 %vm269_vm1, %v6879_v18  ;;  %5133 = vmatmul.mubr.msk.f32.gmra.mrb[18].mxu0 %vm269_vm1, %v6880_v19  ;;  %v6893_v18 = vld [vmem:[#allocation31_spill] sm:$0xff] }
  0xe6   : > { %4911 = vmatprep.mubr.msk.f32.mxu1 %vm269_vm1, %v6881_v20  ;;  %5135 = vmatprep.mubr.msk.f32.mxu0 %vm269_vm1, %v6882_v21  ;;  %v6894_v20 = vld [vmem:[#allocation19_spill] sm:$0xff] }
  0xe9   : > { %4912 = vmatmul.mubr.msk.f32.gmra.mrb[4].mxu1 %vm269_vm1, %v6883_v1  ;;  %5136 = vmatmul.mubr.msk.f32.gmra.mrb[20].mxu0 %vm269_vm1, %v6884_v22  ;;  %v6494_v1 = vld [vmem:[%s5742_s11 + $0x181] sm:$0xff] }
  0xea   : > { %4914 = vmatprep.mubr.msk.f32.mxu1 %vm269_vm1, %v6885_v23  ;;  %5138 = vmatprep.mubr.msk.f32.mxu0 %vm269_vm1, %v6886_v37  ;;  %v6895_v23 = vld [vmem:[#allocation32_spill] sm:$0xff] }
  0xed   : > { %4915 = vmatmul.mubr.msk.f32.gmra.mrb[6].mxu1 %vm269_vm1, %v6887_v3  ;;  %5139 = vmatmul.mubr.msk.f32.gmra.mrb[22].mxu0 %vm269_vm1, %v6888_v33  ;;  %v6896_v3 = vld [vmem:[#allocation20_spill] sm:$0xff] }
  0xee   : > { %4917 = vmatprep.mubr.msk.f32.mxu1 %vm269_vm1, %v6889_v61  ;;  %5141 = vmatprep.mubr.msk.f32.mxu0 %vm269_vm1, %v6890_v12  ;;  %v6897_v61 = vld [vmem:[#allocation34_spill] sm:$0xff] }
  0xf1   : > { %4918 = vmatmul.mubr.msk.f32.gmra.mrb[8].mxu1 %vm269_vm1, %v6891_v14  ;;  %5142 = vmatmul.mubr.msk.f32.gmra.mrb[24].mxu0 %vm269_vm1, %v6892_v16  ;;  %v6505_v14 = vld [vmem:[%s5742_s11 + $0x189] sm:$0xff] }
  0xf2   : > { %4920 = vmatprep.mubr.msk.f32.mxu1 %vm269_vm1, %v6893_v18  ;;  %5144 = vmatprep.mubr.msk.f32.mxu0 %vm269_vm1, %v6894_v20  ;;  %v4346_v18 = vld [vmem:[%s5742_s11 + $0x199] sm:$0xff] }
  0xf5   : > { %4921 = vmatmul.mubr.msk.f32.gmra.mrb[10].mxu1 %vm269_vm1, %v6895_v23  ;;  %5145 = vmatmul.mubr.msk.f32.gmra.mrb[26].mxu0 %vm269_vm1, %v6896_v3  ;;  %v4347_v23 = vld [vmem:[%s5742_s11 + $0x1a1] sm:$0xff]  ;;  %v6899_v3 = vld [vmem:[#allocation38_spill] sm:$0xff] }
  0xf6   : > { %4923 = vmatprep.mubr.msk.f32.mxu1 %vm269_vm1, %v6897_v61  ;;  %5147 = vmatprep.mubr.msk.f32.mxu0 %vm269_vm1, %v6494_v1 }
  0xf9   : > { %4924 = vmatmul.mubr.msk.f32.gmra.mrb[12].mxu1 %vm269_vm1, %v6898_v8  ;;  %5148 = vmatmul.mubr.msk.f32.gmra.mrb[28].mxu0 %vm269_vm1, %v6505_v14 }
  0xfa   : > { %4926 = vmatprep.mubr.msk.f32.mxu1 %vm269_vm1, %v6183_v59  ;;  %5150 = vmatprep.mubr.msk.f32.mxu0 %vm269_vm1, %v4346_v18 }
  0xfd   : > { %4927 = vmatmul.mubr.msk.f32.gmra.mrb[14].mxu1 %vm269_vm1, %v6899_v3  ;;  %5151 = vmatmul.mubr.msk.f32.gmra.mrb[30].mxu0 %vm269_vm1, %v4347_v23 }
  0xfe   : > { %4929 = vmatprep.mubr.msk.f32.mxu1 %vm269_vm1, %v6197_v29  ;;  %5155 = vmatprep.mubr.msk.f32.mxu0 %vm269_vm1, %v5875_v27  ;;  %v6901_v27 = vld [vmem:[#allocation35_spill] sm:$0xff] }
  0xff   : > { %v4412_v29 = vld [vmem:[%s5742_s11 + $0x19a] sm:$0xff] }
 0x101   : > { %4930 = vmatmul.mubr.msk.f32.gmra.mrb[16].mxu1 %vm269_vm1, %v6213_v31  ;;  %5156 = vmatmul.mubr.msk.f32.vlgmr.msra.gmra.mrb[0].mxu0 %vm269_vm1, %v5893_v30  ;;  %v6902_v30 = vld [vmem:[#allocation20_spill] sm:$0xff]  ;;  %v6903_v31 = vld [vmem:[#allocation37_spill] sm:$0xff] }
 0x102   : > { %4932 = vmatprep.mubr.msk.f32.mxu1 %vm269_vm1, %v6218_v0  ;;  %5158 = vmatprep.mubr.msk.f32.mxu0 %vm269_vm1, %v5901_v32  ;;  %v4413_v32 = vld [vmem:[%s5742_s11 + $0x1a2] sm:$0xff] }
 0x105   : > { %4933 = vmatmul.mubr.msk.f32.gmra.mrb[18].mxu1 %vm269_vm1, %v6231_v28  ;;  %5159 = vmatmul.mubr.msk.f32.gmra.mrb[2].mxu0 %vm269_vm1, %v5917_v34 }
 0x106   : > { %4935 = vmatprep.mubr.msk.f32.mxu1 %vm269_vm1, %v6234_v5  ;;  %5161 = vmatprep.mubr.msk.f32.mxu0 %vm269_vm1, %v5923_v36 }
 0x109   : > { %4936 = vmatmul.mubr.msk.f32.gmra.mrb[20].mxu1 %vm269_vm1, %v6245_v7  ;;  %5162 = vmatmul.mubr.msk.f32.gmra.mrb[4].mxu0 %vm269_vm1, %v5937_v38 }
 0x10a   : > { %4938 = vmatprep.mubr.msk.f32.mxu1 %vm269_vm1, %v6248_v10  ;;  %5164 = vmatprep.mubr.msk.f32.mxu0 %vm269_vm1, %v5943_v40 }
 0x10d   : > { %4939 = vmatmul.mubr.msk.f32.gmra.mrb[22].mxu1 %vm269_vm1, %v6259_v57  ;;  %5165 = vmatmul.mubr.msk.f32.gmra.mrb[6].mxu0 %vm269_vm1, %v5957_v42 }
 0x10e   : > { %4941 = vmatprep.mubr.msk.f32.mxu1 %vm269_vm1, %v6262_v51  ;;  %5167 = vmatprep.mubr.msk.f32.mxu0 %vm269_vm1, %v5963_v44 }
 0x111   : > { %4942 = vmatmul.mubr.msk.f32.gmra.mrb[24].mxu1 %vm269_vm1, %v6273_v47  ;;  %5168 = vmatmul.mubr.msk.f32.gmra.mrb[8].mxu0 %vm269_vm1, %v5977_v46 }
 0x112   : > { %4944 = vmatprep.mubr.msk.f32.mxu1 %vm269_vm1, %v6276_v43  ;;  %5170 = vmatprep.mubr.msk.f32.mxu0 %vm269_vm1, %v5983_v48 }
 0x115   : > { %4945 = vmatmul.mubr.msk.f32.gmra.mrb[26].mxu1 %vm269_vm1, %v6287_v39  ;;  %5171 = vmatmul.mubr.msk.f32.gmra.mrb[10].mxu0 %vm269_vm1, %v5997_v50 }
 0x116   : > { %4947 = vmatprep.mubr.msk.f32.mxu1 %vm269_vm1, %v6290_v35  ;;  %5173 = vmatprep.mubr.msk.f32.mxu0 %vm269_vm1, %v6003_v52 }
 0x119   : > { %4948 = vmatmul.mubr.msk.f32.gmra.mrb[28].mxu1 %vm269_vm1, %v6301_v62  ;;  %5174 = vmatmul.mubr.msk.f32.gmra.mrb[12].mxu0 %vm269_vm1, %v6017_v54 }
 0x11a   : > { %4950 = vmatprep.mubr.msk.f32.mxu1 %vm269_vm1, %v6356_v24  ;;  %5176 = vmatprep.mubr.msk.f32.mxu0 %vm269_vm1, %v6021_v56 }
 0x11d   : > { %4951 = vmatmul.mubr.msk.f32.gmra.mrb[30].mxu1 %vm269_vm1, %v6367_v25  ;;  %5177 = vmatmul.mubr.msk.f32.gmra.mrb[14].mxu0 %vm269_vm1, %v6032_v58 }
 0x11e   : > { %4979 = vmatprep.mubr.msk.f32.mxu1 %vm269_vm1, %v5872_v26  ;;  %5179 = vmatprep.mubr.msk.f32.mxu0 %vm269_vm1, %v6038_v60  ;;  %v6900_v26 = vld [vmem:[#allocation33_spill] sm:$0xff] }
 0x121   : > { %4980 = vmatmul.mubr.msk.f32.vlgmr.msra.gmra.mrb[16].mxu1 %vm269_vm1, %v6872_v11  ;;  %5180 = vmatmul.mubr.msk.f32.gmra.mrb[16].mxu0 %vm269_vm1, %v6056_v63 }
 0x122   : > { %4982 = vmatprep.mubr.msk.f32.mxu1 %vm269_vm1, %v6874_v13  ;;  %5182 = vmatprep.mubr.msk.f32.mxu0 %vm269_vm1, %v6064_v2 }
 0x125   : > { %4983 = vmatmul.mubr.msk.f32.gmra.mrb[18].mxu1 %vm269_vm1, %v6876_v15  ;;  %5183 = vmatmul.mubr.msk.f32.gmra.mrb[18].mxu0 %vm269_vm1, %v6080_v4 }
 0x126   : > { %4985 = vmatprep.mubr.msk.f32.mxu1 %vm269_vm1, %v6878_v17  ;;  %5185 = vmatprep.mubr.msk.f32.mxu0 %vm269_vm1, %v6086_v6 }
 0x129   : > { %4986 = vmatmul.mubr.msk.f32.gmra.mrb[20].mxu1 %vm269_vm1, %v6880_v19  ;;  %5186 = vmatmul.mubr.msk.f32.gmra.mrb[20].mxu0 %vm269_vm1, %v6100_v9 }
 0x12a   : > { %4988 = vmatprep.mubr.msk.f32.mxu1 %vm269_vm1, %v6882_v21  ;;  %5188 = vmatprep.mubr.msk.f32.mxu0 %vm269_vm1, %v6106_v55 }
 0x12d   : > { %4989 = vmatmul.mubr.msk.f32.gmra.mrb[22].mxu1 %vm269_vm1, %v6884_v22  ;;  %5189 = vmatmul.mubr.msk.f32.gmra.mrb[22].mxu0 %vm269_vm1, %v6120_v53 }
 0x12e   : > { %4991 = vmatprep.mubr.msk.f32.mxu1 %vm269_vm1, %v6886_v37  ;;  %5191 = vmatprep.mubr.msk.f32.mxu0 %vm269_vm1, %v6126_v49 }
 0x131   : > { %4992 = vmatmul.mubr.msk.f32.gmra.mrb[24].mxu1 %vm269_vm1, %v6888_v33  ;;  %5192 = vmatmul.mubr.msk.f32.gmra.mrb[24].mxu0 %vm269_vm1, %v6140_v45 }
 0x132   : > { %4994 = vmatprep.mubr.msk.f32.mxu1 %vm269_vm1, %v6890_v12  ;;  %5194 = vmatprep.mubr.msk.f32.mxu0 %vm269_vm1, %v6146_v41 }
 0x135   : > { %4995 = vmatmul.mubr.msk.f32.gmra.mrb[26].mxu1 %vm269_vm1, %v6892_v16  ;;  %5195 = vmatmul.mubr.msk.f32.gmra.mrb[26].mxu0 %vm269_vm1, %v6900_v26 }
 0x136   : > { %4997 = vmatprep.mubr.msk.f32.mxu1 %vm269_vm1, %v6894_v20  ;;  %5197 = vmatprep.mubr.msk.f32.mxu0 %vm269_vm1, %v6901_v27 }
 0x139   : > { %4998 = vmatmul.mubr.msk.f32.gmra.mrb[28].mxu1 %vm269_vm1, %v6902_v30  ;;  %5198 = vmatmul.mubr.msk.f32.gmra.mrb[28].mxu0 %vm269_vm1, %v6903_v31 }
 0x13a   : > { %5000 = vmatprep.mubr.msk.f32.mxu1 %vm269_vm1, %v6494_v1  ;;  %5200 = vmatprep.mubr.msk.f32.mxu0 %vm269_vm1, %v4412_v29 }
 0x13d   : > { %5001 = vmatmul.mubr.msk.f32.gmra.mrb[30].mxu1 %vm269_vm1, %v6505_v14  ;;  %5201 = vmatmul.mubr.msk.f32.gmra.mrb[30].mxu0 %vm269_vm1, %v4413_v32 }
 0x1b4   : > { %v4907_v34 = vpop.f32.mrb[0].mxu1 }
 0x1b5   : > { %v1511_v35 = vpop.f32.mrb[1].mxu1 }
 0x1b8   : > { %v4910_v36 = vpop.f32.mrb[2].mxu1 }
 0x1b9   : > { %v1521_v38 = vpop.f32.mrb[3].mxu1 }
 0x1bc   : > { %v4913_v39 = vpop.f32.mrb[4].mxu1 }
 0x1bd   : > { %v1531_v40 = vpop.f32.mrb[5].mxu1 }
 0x1c0   : > { %v4916_v41 = vpop.f32.mrb[6].mxu1 }
 0x1c1   : > { %v1541_v42 = vpop.f32.mrb[7].mxu1 }
 0x1c4   : > { %v4919_v43 = vpop.f32.mrb[8].mxu1 }
 0x1c5   : > { %v1551_v44 = vpop.f32.mrb[9].mxu1 }
 0x1c8   : > { %v6647_v45 = vpop.f32.mrb[10].mxu1 }
 0x1c9   : > { %v6649_v46 = vpop.f32.mrb[11].mxu1 }
 0x1cc   : > { %v6651_v47 = vpop.f32.mrb[12].mxu1 }
 0x1cd   : > { %v6653_v48 = vpop.f32.mrb[13].mxu1 }
 0x1d0   : > { %v6658_v49 = vpop.f32.mrb[14].mxu1 }
 0x1d1   : > { %v6660_v50 = vpop.f32.mrb[15].mxu1 }
 0x1d4   : > { %v5157_v51 = vpop.f32.mrb[0].mxu0 }
 0x1d5   : > { %v5205_v52 = vadd.f32 %v5157_v51, %v4907_v34  ;;  %v3464_v53 = vpop.f32.mrb[1].mxu0 }
 0x1d6   : > { %v5206_v54 = vadd.f32 %v3464_v53, %v1511_v35 }
 0x1d7   : > { %3656 = vst [vmem:[%s6663_s7 + $0x8] sm:$0xff] %v5205_v52  ;;  %v3726_v56 = vmul.f32 %v5205_v52, %v5205_v52 }
 0x1d8   : > { %3655 = vst [vmem:[%s6663_s7] sm:$0xff] %v5206_v54  ;;  %v3687_v58 = vadd.f32 %v5206_v54, %v5205_v52  ;;  %v3725_v59 = vmul.f32 %v5206_v54, %v5206_v54  ;;  %v5160_v60 = vpop.f32.mrb[2].mxu0 }
 0x1d9   : > { %v5207_v62 = vadd.f32 %v5160_v60, %v4910_v36  ;;  %v3474_v63 = vpop.f32.mrb[3].mxu0 }
 0x1da   : > { %v3757_v0 = vadd.f32 %v3726_v56, %v3725_v59  ;;  %v5208_v2 = vadd.f32 %v3474_v63, %v1521_v38 }
 0x1db   : > { %3658 = vst [vmem:[%s6663_s7 + $0x18] sm:$0xff] %v5207_v62  ;;  %v3728_v10 = vmul.f32 %v5207_v62, %v5207_v62 }
 0x1dc   : > { %3657 = vst [vmem:[%s6663_s7 + $0x10] sm:$0xff] %v5208_v2  ;;  %v3688_v4 = vadd.f32 %v5208_v2, %v3687_v58  ;;  %v3727_v5 = vmul.f32 %v5208_v2, %v5208_v2  ;;  %v5163_v6 = vpop.f32.mrb[4].mxu0 }
 0x1dd   : > { %v5209_v7 = vadd.f32 %v5163_v6, %v4913_v39  ;;  %v3484_v9 = vpop.f32.mrb[5].mxu0 }
 0x1de   : > { %v3758_v55 = vadd.f32 %v3757_v0, %v3727_v5  ;;  %v5210_v57 = vadd.f32 %v3484_v9, %v1531_v40  ;;  %v3689_v28 = vadd.f32 %v5207_v62, %v3688_v4 }
 0x1df   : > { %3660 = vst [vmem:[%s6663_s7 + $0x28] sm:$0xff] %v5209_v7  ;;  %v3730_v17 = vmul.f32 %v5209_v7, %v5209_v7 }
 0x1e0   : > { %3659 = vst [vmem:[%s6663_s7 + $0x20] sm:$0xff] %v5210_v57  ;;  %v3690_v24 = vadd.f32 %v5210_v57, %v3689_v28  ;;  %v3729_v25 = vmul.f32 %v5210_v57, %v5210_v57  ;;  %v3759_v8 = vadd.f32 %v3758_v55, %v3728_v10  ;;  %v5166_v11 = vpop.f32.mrb[6].mxu0 }
 0x1e1   : > { %v5211_v13 = vadd.f32 %v5166_v11, %v4916_v41  ;;  %v3494_v15 = vpop.f32.mrb[7].mxu0 }
 0x1e2   : > { %v3760_v19 = vadd.f32 %v3759_v8, %v3729_v25  ;;  %v5212_v21 = vadd.f32 %v3494_v15, %v1541_v42  ;;  %v3691_v22 = vadd.f32 %v5209_v7, %v3690_v24 }
 0x1e3   : > { %3662 = vst [vmem:[%s6663_s7 + $0x38] sm:$0xff] %v5211_v13  ;;  %v3732_v3 = vmul.f32 %v5211_v13, %v5211_v13 }
 0x1e4   : > { %3661 = vst [vmem:[%s6663_s7 + $0x30] sm:$0xff] %v5212_v21  ;;  %v3692_v37 = vadd.f32 %v5212_v21, %v3691_v22  ;;  %v3731_v33 = vmul.f32 %v5212_v21, %v5212_v21  ;;  %v3761_v12 = vadd.f32 %v3760_v19, %v3730_v17  ;;  %v5169_v16 = vpop.f32.mrb[8].mxu0 }
 0x1e5   : > { %v5213_v20 = vadd.f32 %v5169_v16, %v4919_v43  ;;  %v3504_v1 = vpop.f32.mrb[9].mxu0 }
 0x1e6   : > { %v3762_v61 = vadd.f32 %v3761_v12, %v3731_v33  ;;  %v5214_v14 = vadd.f32 %v3504_v1, %v1551_v44  ;;  %v3693_v18 = vadd.f32 %v5211_v13, %v3692_v37 }
 0x1e7   : > { %3664 = vst [vmem:[%s6663_s7 + $0x48] sm:$0xff] %v5213_v20  ;;  %v3734_v32 = vmul.f32 %v5213_v20, %v5213_v20 }
 0x1e8   : > { %3663 = vst [vmem:[%s6663_s7 + $0x40] sm:$0xff] %v5214_v14  ;;  %v3694_v23 = vadd.f32 %v5214_v14, %v3693_v18  ;;  %v3733_v26 = vmul.f32 %v5214_v14, %v5214_v14  ;;  %v3763_v27 = vadd.f32 %v3762_v61, %v3732_v3  ;;  %v5172_v29 = vpop.f32.mrb[10].mxu0 }
 0x1e9   : > { %v5215_v30 = vadd.f32 %v5172_v29, %v6647_v45  ;;  %v3514_v31 = vpop.f32.mrb[11].mxu0 }
 0x1ea   : > { %v3764_v34 = vadd.f32 %v3763_v27, %v3733_v26  ;;  %v5216_v35 = vadd.f32 %v3514_v31, %v6649_v46  ;;  %v3695_v36 = vadd.f32 %v5213_v20, %v3694_v23 }
 0x1eb   : > { %3666 = vst [vmem:[%s6663_s7 + $0x58] sm:$0xff] %v5215_v30  ;;  %v3736_v44 = vmul.f32 %v5215_v30, %v5215_v30 }
 0x1ec   : > { %3665 = vst [vmem:[%s6663_s7 + $0x50] sm:$0xff] %v5216_v35  ;;  %v3696_v38 = vadd.f32 %v5216_v35, %v3695_v36  ;;  %v3735_v39 = vmul.f32 %v5216_v35, %v5216_v35  ;;  %v3765_v40 = vadd.f32 %v3764_v34, %v3734_v32  ;;  %v5175_v41 = vpop.f32.mrb[12].mxu0 }
 0x1ed   : > { %v5217_v42 = vadd.f32 %v5175_v41, %v6651_v47  ;;  %v3524_v43 = vpop.f32.mrb[13].mxu0 }
 0x1ee   : > { %v3766_v45 = vadd.f32 %v3765_v40, %v3735_v39  ;;  %v5218_v51 = vadd.f32 %v3524_v43, %v6653_v48  ;;  %v3697_v52 = vadd.f32 %v5215_v30, %v3696_v38 }
 0x1ef   : > { %3668 = vst [vmem:[%s6663_s7 + $0x68] sm:$0xff] %v5217_v42  ;;  %v3738_v60 = vmul.f32 %v5217_v42, %v5217_v42 }
 0x1f0   : > { %3667 = vst [vmem:[%s6663_s7 + $0x60] sm:$0xff] %v5218_v51  ;;  %v3698_v46 = vadd.f32 %v5218_v51, %v3697_v52  ;;  %v3737_v53 = vmul.f32 %v5218_v51, %v5218_v51  ;;  %v3767_v54 = vadd.f32 %v3766_v45, %v3736_v44  ;;  %v5178_v56 = vpop.f32.mrb[14].mxu0 }
 0x1f1   : > { %v5219_v58 = vadd.f32 %v5178_v56, %v6658_v49  ;;  %v3534_v59 = vpop.f32.mrb[15].mxu0 }
 0x1f2   : > { %v3768_v62 = vadd.f32 %v3767_v54, %v3737_v53  ;;  %v5220_v47 = vadd.f32 %v3534_v59, %v6660_v50  ;;  %v3699_v63 = vadd.f32 %v5217_v42, %v3698_v46 }
 0x1f3   : > { %3670 = vst [vmem:[%s6663_s7 + $0x78] sm:$0xff] %v5219_v58  ;;  %v3740_v10 = vmul.f32 %v5219_v58, %v5219_v58 }
 0x1f4   : > { %3669 = vst [vmem:[%s6663_s7 + $0x70] sm:$0xff] %v5220_v47  ;;  %v3700_v48 = vadd.f32 %v5220_v47, %v3699_v63  ;;  %v3739_v0 = vmul.f32 %v5220_v47, %v5220_v47  ;;  %v3769_v2 = vadd.f32 %v3768_v62, %v3738_v60  ;;  %v4981_v4 = vpop.f32.mrb[16].mxu1  ;;  %v5181_v5 = vpop.f32.mrb[16].mxu0 }
 0x1f5   : > { %v5221_v6 = vadd.f32 %v5181_v5, %v4981_v4  ;;  %v1981_v7 = vpop.f32.mrb[17].mxu1  ;;  %v3544_v9 = vpop.f32.mrb[17].mxu0 }
 0x1f6   : > { %v3770_v49 = vadd.f32 %v3769_v2, %v3739_v0  ;;  %v5222_v55 = vadd.f32 %v3544_v9, %v1981_v7  ;;  %v3701_v57 = vadd.f32 %v5219_v58, %v3700_v48 }
 0x1f7   : > { %3672 = vst [vmem:[%s6663_s7 + $0x88] sm:$0xff] %v5221_v6  ;;  %v3742_v17 = vmul.f32 %v5221_v6, %v5221_v6 }
 0x1f8   : > { %3671 = vst [vmem:[%s6663_s7 + $0x80] sm:$0xff] %v5222_v55  ;;  %v3702_v50 = vadd.f32 %v5222_v55, %v3701_v57  ;;  %v3741_v28 = vmul.f32 %v5222_v55, %v5222_v55  ;;  %v3771_v24 = vadd.f32 %v3770_v49, %v3740_v10  ;;  %v4984_v25 = vpop.f32.mrb[18].mxu1  ;;  %v5184_v8 = vpop.f32.mrb[18].mxu0 }
 0x1f9   : > { %v5223_v11 = vadd.f32 %v5184_v8, %v4984_v25  ;;  %v1991_v13 = vpop.f32.mrb[19].mxu1  ;;  %v3554_v15 = vpop.f32.mrb[19].mxu0 }
 0x1fa   : > { %v3772_v19 = vadd.f32 %v3771_v24, %v3741_v28  ;;  %v5224_v21 = vadd.f32 %v3554_v15, %v1991_v13  ;;  %v3703_v22 = vadd.f32 %v5221_v6, %v3702_v50 }
 0x1fb   : > { %3674 = vst [vmem:[%s6663_s7 + $0x98] sm:$0xff] %v5223_v11  ;;  %v3744_v14 = vmul.f32 %v5223_v11, %v5223_v11 }
 0x1fc   : > { %3673 = vst [vmem:[%s6663_s7 + $0x90] sm:$0xff] %v5224_v21  ;;  %v3704_v37 = vadd.f32 %v5224_v21, %v3703_v22  ;;  %v3743_v33 = vmul.f32 %v5224_v21, %v5224_v21  ;;  %v3773_v12 = vadd.f32 %v3772_v19, %v3742_v17  ;;  %v4987_v16 = vpop.f32.mrb[20].mxu1  ;;  %v5187_v20 = vpop.f32.mrb[20].mxu0 }
 0x1fd   : > { %v5225_v1 = vadd.f32 %v5187_v20, %v4987_v16  ;;  %v2001_v3 = vpop.f32.mrb[21].mxu1  ;;  %v3564_v61 = vpop.f32.mrb[21].mxu0 }
 0x1fe   : > { %v3774_v18 = vadd.f32 %v3773_v12, %v3743_v33  ;;  %v5226_v23 = vadd.f32 %v3564_v61, %v2001_v3  ;;  %v3705_v26 = vadd.f32 %v5223_v11, %v3704_v37 }
 0x1ff   : > { %3676 = vst [vmem:[%s6663_s7 + $0xa8] sm:$0xff] %v5225_v1  ;;  %v3746_v38 = vmul.f32 %v5225_v1, %v5225_v1 }
 0x200   : > { %3675 = vst [vmem:[%s6663_s7 + $0xa0] sm:$0xff] %v5226_v23  ;;  %v3706_v27 = vadd.f32 %v5226_v23, %v3705_v26  ;;  %v3745_v29 = vmul.f32 %v5226_v23, %v5226_v23  ;;  %v3775_v30 = vadd.f32 %v3774_v18, %v3744_v14  ;;  %v4990_v31 = vpop.f32.mrb[22].mxu1  ;;  %v5190_v32 = vpop.f32.mrb[22].mxu0 }
 0x201   : > { %v5227_v34 = vadd.f32 %v5190_v32, %v4990_v31  ;;  %v2011_v35 = vpop.f32.mrb[23].mxu1  ;;  %v3574_v36 = vpop.f32.mrb[23].mxu0 }
 0x202   : > { %v3776_v39 = vadd.f32 %v3775_v30, %v3745_v29  ;;  %v5228_v40 = vadd.f32 %v3574_v36, %v2011_v35  ;;  %v3707_v41 = vadd.f32 %v5225_v1, %v3706_v27 }
 0x203   : > { %3678 = vst [vmem:[%s6663_s7 + $0xb8] sm:$0xff] %v5227_v34  ;;  %v3748_v54 = vmul.f32 %v5227_v34, %v5227_v34 }
 0x204   : > { %3677 = vst [vmem:[%s6663_s7 + $0xb0] sm:$0xff] %v5228_v40  ;;  %v3708_v42 = vadd.f32 %v5228_v40, %v3707_v41  ;;  %v3747_v43 = vmul.f32 %v5228_v40, %v5228_v40  ;;  %v3777_v44 = vadd.f32 %v3776_v39, %v3746_v38  ;;  %v4993_v45 = vpop.f32.mrb[24].mxu1  ;;  %v5193_v51 = vpop.f32.mrb[24].mxu0 }
 0x205   : > { %v5229_v52 = vadd.f32 %v5193_v51, %v4993_v45  ;;  %v2021_v46 = vpop.f32.mrb[25].mxu1  ;;  %v3584_v53 = vpop.f32.mrb[25].mxu0 }
 0x206   : > { %v3778_v56 = vadd.f32 %v3777_v44, %v3747_v43  ;;  %v5230_v58 = vadd.f32 %v3584_v53, %v2021_v46  ;;  %v3709_v59 = vadd.f32 %v5227_v34, %v3708_v42 }
 0x207   : > { %3680 = vst [vmem:[%s6663_s7 + $0xc8] sm:$0xff] %v5229_v52  ;;  %v3750_v5 = vmul.f32 %v5229_v52, %v5229_v52 }
 0x208   : > { %3679 = vst [vmem:[%s6663_s7 + $0xc0] sm:$0xff] %v5230_v58  ;;  %v3710_v60 = vadd.f32 %v5230_v58, %v3709_v59  ;;  %v3749_v62 = vmul.f32 %v5230_v58, %v5230_v58  ;;  %v3779_v47 = vadd.f32 %v3778_v56, %v3748_v54  ;;  %v4996_v63 = vpop.f32.mrb[26].mxu1  ;;  %v5196_v48 = vpop.f32.mrb[26].mxu0 }
 0x209   : > { %v5231_v0 = vadd.f32 %v5196_v48, %v4996_v63  ;;  %v2031_v2 = vpop.f32.mrb[27].mxu1  ;;  %v3594_v4 = vpop.f32.mrb[27].mxu0 }
 0x20a   : > { %v3780_v6 = vadd.f32 %v3779_v47, %v3749_v62  ;;  %v5232_v7 = vadd.f32 %v3594_v4, %v2031_v2  ;;  %v3711_v9 = vadd.f32 %v5229_v52, %v3710_v60 }
 0x20b   : > { %3682 = vst [vmem:[%s6663_s7 + $0xd8] sm:$0xff] %v5231_v0  ;;  %v3752_v8 = vmul.f32 %v5231_v0, %v5231_v0 }
 0x20c   : > { %3681 = vst [vmem:[%s6663_s7 + $0xd0] sm:$0xff] %v5232_v7  ;;  %v3712_v10 = vadd.f32 %v5232_v7, %v3711_v9  ;;  %v3751_v49 = vmul.f32 %v5232_v7, %v5232_v7  ;;  %v3781_v55 = vadd.f32 %v3780_v6, %v3750_v5  ;;  %v4999_v57 = vpop.f32.mrb[28].mxu1  ;;  %v5199_v50 = vpop.f32.mrb[28].mxu0 }
 0x20d   : > { %v5233_v28 = vadd.f32 %v5199_v50, %v4999_v57  ;;  %v2041_v24 = vpop.f32.mrb[29].mxu1  ;;  %v3604_v25 = vpop.f32.mrb[29].mxu0 }
 0x20e   : > { %v3782_v11 = vadd.f32 %v3781_v55, %v3751_v49  ;;  %v5234_v13 = vadd.f32 %v3604_v25, %v2041_v24  ;;  %v3713_v15 = vadd.f32 %v5231_v0, %v3712_v10 }
 0x20f   : > { %3684 = vst [vmem:[%s6663_s7 + $0xe8] sm:$0xff] %v5233_v28  ;;  %v3754_v20 = vmul.f32 %v5233_v28, %v5233_v28 }
 0x210   : > { %3683 = vst [vmem:[%s6663_s7 + $0xe0] sm:$0xff] %v5234_v13  ;;  %v3714_v17 = vadd.f32 %v5234_v13, %v3713_v15  ;;  %v3753_v19 = vmul.f32 %v5234_v13, %v5234_v13  ;;  %v3783_v21 = vadd.f32 %v3782_v11, %v3752_v8  ;;  %v5002_v22 = vpop.f32.mrb[30].mxu1  ;;  %v5202_v37 = vpop.f32.mrb[30].mxu0 }
 0x211   : > { %v5235_v33 = vadd.f32 %v5202_v37, %v5002_v22  ;;  %v2051_v12 = vpop.f32.mrb[31].mxu1  ;;  %v3614_v16 = vpop.f32.mrb[31].mxu0 }
 0x212   : > { %v3784_v1 = vadd.f32 %v3783_v21, %v3753_v19  ;;  %v5236_v3 = vadd.f32 %v3614_v16, %v2051_v12  ;;  %v3715_v61 = vadd.f32 %v5233_v28, %v3714_v17 }
 0x213   : > { %3686 = vst [vmem:[%s6663_s7 + $0xf8] sm:$0xff] %v5235_v33 }
 0x214   : > { %3685 = vst [vmem:[%s6663_s7 + $0xf0] sm:$0xff] %v5236_v3  ;;  %v3716_v14 = vadd.f32 %v5236_v3, %v3715_v61  ;;  %v3755_v18 = vmul.f32 %v5236_v3, %v5236_v3  ;;  %v3785_v23 = vadd.f32 %v3784_v1, %v3754_v20 }
 0x215   : > { %5537 = shalt.err (!%p5534_p5)
}
 0x216   : > { %s5538_s28 = scalar_lea.hbm %s6706_s18, 4096  ;;  %s5542_s4 = scalar_lea.hbm %s6791_s2, 8192 }
 0x217   : > { %p5539_p6 = scmp.ne.s32.totalorder %s6706_s18, %s5538_s28  ;;  %p5543_p10 = scmp.lt.u32.totalorder %s6706_s18, %s6791_s2 }
 0x218   : > { %p5544_p11 = scmp.lt.u32.totalorder %s5542_s4, %s5538_s28  ;;  %p5546_p13 = scmp.lt.u32.totalorder %s5538_s28, %s6706_s18 }
 0x219   : > { %p5540_p7 = pnand %p5539_p6, %p5700_p4 }
 0x21a   : > { %p5545_p12 = por %p5544_p11, %p5543_p10 }
 0x21b   : > { %p5541_p9 = pneg %p5540_p7 }
 0x21c   : > { %p5547_p0 = por %p5546_p13, %p5545_p12 }
 0x21e   : > { %p5548_p1 = pnand %p5547_p0, %p5541_p9 }
 0x220   : > { %5551 = shalt.err (!%p5548_p1)
}
 0x221   : > { %s5637_s8 = smov 128   ;;  %s5638_s10 = smov 8   ;;  %v3756_v26 = vmul.f32 %v5235_v33, %v5235_v33  ;;  %v3717_v27 = vadd.f32 %v5235_v33, %v3716_v14  ;;  %v3786_v29 = vadd.f32 %v3785_v23, %v3755_v18 }
 0x222   : > { %5462 = dma.vmem_to_hbm [thread:$0]  (%p5700_p4), %s6708_s9, 4096, %s6706_s18, %s3796_s19, %s5637_s8, %s5637_s8, %s5638_s10  }
 0x223   : > { %v3718_v30 = vrot.slane %v3717_v27, 4  ;;  %v3787_v31 = vadd.f32 %v3786_v29, %v3756_v26  ;;  %s3949_s11 = sshll.u32 %s6656_s5, 1  ;;  %s4452_s21 = sshll.u32 %s5626_s15, 5 }
 0x224   : > { %s190_s23 = scalar_lea.vmem [#allocation4], %s3949_s11  ;;  %s6741_s19 = scalar_lea.hbm %s6792_s3, %s4452_s21 }
 0x225   : > { %v3719_v32 = vadd.f32 %v3718_v30, %v3717_v27  ;;  %v3788_v34 = vrot.slane %v3787_v31, 4  ;;  %s3832_s26 = sshll.u32 %s190_s23, 4  ;;  %s3801_s27 = scalar_lea.sflag [#allocation5], %s6656_s5  ;;  %s6743_s26 = int_to_ptr.vmem [resolvable:$true] %s3832_s26 }
 0x226   : > { %s5552_s28 = scalar_lea.vmem %s6743_s26, 32  ;;  %s5639_s15 = smov [#allocation4]  }
 0x227   : > { %v3720_v35 = vrot.slane %v3719_v32, 2  ;;  %v3789_v36 = vadd.f32 %v3788_v34, %v3787_v31  ;;  %p5553_p2 = scmp.ne.s32.totalorder %s6743_s26, %s5552_s28  ;;  %s5556_s29 = sshll.u32 %s5639_s15, 4  ;;  %s5557_s29 = int_to_ptr.vmem [resolvable:$false] %s5556_s29 }
 0x228   : > { %s5558_s30 = scalar_lea.vmem %s5557_s29, 64  ;;  %p5559_p6 = scmp.lt.s32.totalorder %s6743_s26, %s5557_s29 }
 0x229   : > { %v3721_v38 = vadd.f32 %v3720_v35, %v3719_v32  ;;  %v3790_v39 = vrot.slane %v3789_v36, 2  ;;  %p5554_p3 = pnand %p5553_p2, %p5700_p4  ;;  %p5560_p7 = scmp.lt.s32.totalorder %s5558_s30, %s5552_s28 }
 0x22b   : > { %v3722_v40 = vrot.slane %v3721_v38, 1  ;;  %v3791_v41 = vadd.f32 %v3790_v39, %v3789_v36  ;;  %p5555_p5 = pneg %p5554_p3  ;;  %p5561_p9 = por %p5560_p7, %p5559_p6 }
 0x22d   : > { %v3723_v42 = vadd.f32 %v3722_v40, %v3721_v38  ;;  %v3792_v43 = vrot.slane %v3791_v41, 1  ;;  %p5562_p10 = pnand %p5561_p9, %p5555_p5 }
 0x22f   : > { %3724 = vst [vmem:[%s190_s23] sm:$0x1] %v3723_v42  ;;  %v3793_v44 = vadd.f32 %v3792_v43, %v3791_v41 }
 0x231   : > { %3794 = vst [vmem:[%s190_s23 + $0x1] sm:$0x1] %v3793_v44 }
 0x232   : > { %5565 = shalt.err (!%p5562_p10)
}
 0x233   : > { %s5566_s5 = scalar_lea.hbm %s6741_s19, 32  ;;  %s5570_s7 = scalar_lea.hbm %s6792_s3, 64 }
 0x234   : > { %p5567_p11 = scmp.ne.s32.totalorder %s6741_s19, %s5566_s5  ;;  %p5571_p0 = scmp.lt.u32.totalorder %s6741_s19, %s6792_s3 }
 0x235   : > { %p5572_p1 = scmp.lt.u32.totalorder %s5570_s7, %s5566_s5  ;;  %p5574_p3 = scmp.lt.u32.totalorder %s5566_s5, %s6741_s19 }
 0x236   : > { %p5568_p12 = pnand %p5567_p11, %p5700_p4 }
 0x237   : > { %p5573_p2 = por %p5572_p1, %p5571_p0 }
 0x238   : > { %p5569_p13 = pneg %p5568_p12 }
 0x239   : > { %p5575_p5 = por %p5574_p3, %p5573_p2 }
 0x23b   : > { %p5576_p6 = pnand %p5575_p5, %p5569_p13 }
 0x23d   : > { %5579 = shalt.err (!%p5576_p6)
}
 0x23e   : > { %5463 = dma.vmem_to_hbm [thread:$0]  (%p5700_p4), %s6743_s26, 32, %s6741_s19, %s3801_s27  }
 0x23f PF: > { %p5473_p7 = scmp.ge.s32.totalorder %s5634_s17, 2  ;;  %s3844_s11 = sand.u32 1, %s5614_s12  }
 0x240   : > { %s3845_s21 = scalar_lea.sflag [#allocation3], %s3844_s11 }
 0x241   : > { %p5467_p9 = pnand %p5473_p7, %p5707_p8 }
 0x243   : > { %5605 = dma.done.wait (!%p5467_p9), %s3845_s21, 4096  }
 0x244   : > { %5607 = vsyncadd (!%p5467_p9), %s3845_s21, 4294963200  ;;  %s3854_s23 = scalar_lea.sflag [#allocation5], %s3844_s11 }
 0x245   : > { %5609 = dma.done.wait (!%p5467_p9), %s3854_s23, 32  }
 0x246   : > { %5611 = vsyncadd (!%p5467_p9), %s3854_s23, 4294967264  ;;  %s20_s17 = sadd.s32 1, %s5634_s17   ;;  %s6904_s12 = smov %s5618_s13 }
 0x247   : > { %p17_p10 = scmp.ge.s32.totalorder %s20_s17, 4   ;;  %s6905_s13 = smov %s5622_s14 }
 0x248   : > { %s6906_s14 = smov %s5713_s25  ;;  %s6907_s15 = smov %s5630_s16 }
 0x249   : > { %s6908_s16 = smov %s6910_s20  ;;  %19 = sbr.rel (!%p17_p10) target bundleno = 6 (0x6), region = 91 }
 0x250   :  { %3859 = vsyncpa [#allocation3], 1 }
 0x251   :  { %3861 = vsyncpa [#allocation3 + $0x1], 1 }
 0x252   :  { %3862 = vsyncpa [#allocation5], 1 }
 0x253   :  { %3864 = vsyncpa [#allocation5 + $0x1], 1 }

</bundles_post_ra>
